<compile_context>
chip_gen: v6e
topology: v6e:2x2x1
jax: 0.10.0
libtpu: 0.0.40
codegen_flags: <defaults>
</compile_context>

<pallas_src>
import numpy as np
import jax
import jax.numpy as jnp
from jax.experimental import pallas as pl

# ---- model dimensions (small, consistent with the forward) -----------------
B = 2            # batch
S = 8            # sequence length
H = 32           # hidden size
NH = 2           # attention heads
DH = H // NH     # head dim
I = 64           # FFN intermediate size
L = 2            # encoder layers
VOCAB = 100
NTYPES = 2
NUM_CLASSES = 3
NPAD = 128       # lane-dense padding for the classifier output
LN_EPS = 1e-12


# ---------------------------------------------------------------------------
# Single fused kernel: embedding-LN -> L encoder layers -> pooler -> classifier
# ---------------------------------------------------------------------------
def fused_bert_head_kernel(
        emb_ref,                       # (B*S, H)  token+segment+position embedding sum
        mask_ref,                      # (B, 1, S) additive attention mask (0 / -1e9)
        embg_ref, embb_ref,            # (1, H)    embedding LayerNorm
        wqkv_ref, bqkv_ref,            # (L, H, 3H), (L, 1, 3H)   fused QKV (Q pre-scaled)
        wo_ref, bo_ref,                # (L, H, H),  (L, 1, H)    attention output proj
        ln1g_ref, ln1b_ref,            # (L, 1, H)
        w1_ref, b1_ref,                # (L, H, I),  (L, 1, I)    FFN in
        w2_ref, b2_ref,                # (L, I, H),  (L, 1, H)    FFN out
        ln2g_ref, ln2b_ref,            # (L, 1, H)
        poolw_ref, poolb_ref,          # (H, H), (1, H)           pooler
        fcw_ref, fcb_ref,              # (H, NPAD), (1, NPAD)     classifier (zero-padded)
        out_ref):                      # (B, NPAD)

    def _ln(t, g, b):
        mu = jnp.mean(t, axis=-1, keepdims=True)
        var = jnp.mean((t - mu) ** 2, axis=-1, keepdims=True)
        return (t - mu) * jax.lax.rsqrt(var + LN_EPS) * g + b

    mask = mask_ref[...]                                       # (B, 1, S)

    # Embedding LayerNorm (no residual stream).
    x = _ln(emb_ref[...], embg_ref[...], embb_ref[...])        # (B*S, H)

    # Encoder layers. Statically unrolled (L=2, everything resident in VMEM);
    # for large L switch to lax.fori_loop over the same stacked [L, ...] refs.
    for l in range(L):
        # --- fused QKV projection (Q already carries the 1/sqrt(DH) scale) ---
        qkv = jnp.dot(x, wqkv_ref[l], preferred_element_type=jnp.float32) + bqkv_ref[l]
        q = qkv[:, 0 * H:1 * H].reshape(B, S, H)
        k = qkv[:, 1 * H:2 * H].reshape(B, S, H)
        v = qkv[:, 2 * H:3 * H].reshape(B, S, H)

        # --- multi-head attention, all heads in-kernel, no transposes ---
        wo = wo_ref[l]                                         # (H, H)
        attn = jnp.zeros((B * S, H), jnp.float32)
        for h in range(NH):
            sl = slice(h * DH, (h + 1) * DH)
            qh, kh, vh = q[:, :, sl], k[:, :, sl], v[:, :, sl]  # (B, S, DH)
            # contract last dims of q and k -> no K transpose materialized
            sc = jnp.einsum('bqd,bkd->bqk', qh, kh,
                            preferred_element_type=jnp.float32) + mask
            sc = sc - jnp.max(sc, axis=-1, keepdims=True)
            p = jnp.exp(sc)
            p = p / jnp.sum(p, axis=-1, keepdims=True)
            ctx = jnp.einsum('bqk,bkd->bqd', p, vh,
                             preferred_element_type=jnp.float32)
            # fold the output projection per-head (equivalent to concat + ctx @ Wo)
            attn = attn + jnp.dot(ctx.reshape(B * S, DH), wo[sl, :],
                                  preferred_element_type=jnp.float32)
        attn = attn + bo_ref[l]

        # --- add & LayerNorm 1 ---
        x = _ln(attn + x, ln1g_ref[l], ln1b_ref[l])

        # --- FFN (GELU) + add & LayerNorm 2 ---
        h1 = jnp.dot(x, w1_ref[l], preferred_element_type=jnp.float32) + b1_ref[l]
        # tanh-approximate GELU (HF BERT uses erf-GELU; close enough for the
        # synthetic-weight model and lowers cleanly to EUP tanh).
        h1 = jax.nn.gelu(h1, approximate=True)
        h2 = jnp.dot(h1, w2_ref[l], preferred_element_type=jnp.float32) + b2_ref[l]
        x = _ln(h2 + x, ln2g_ref[l], ln2b_ref[l])

    # --- CLS pooler (tanh) + classifier, lane-dense padded output ---
    cls = jnp.concatenate([x[b * S:b * S + 1, :] for b in range(B)], axis=0)  # (B, H)
    pooled = jnp.tanh(jnp.dot(cls, poolw_ref[...],
                              preferred_element_type=jnp.float32) + poolb_ref[...])
    # TODO(synk): nn.Dropout(0.1) is stochastic in train mode; applied here as
    # eval-mode identity (matches model.eval() semantics).
    out_ref[...] = jnp.dot(pooled, fcw_ref[...],
                           preferred_element_type=jnp.float32) + fcb_ref[...]


# ---------------------------------------------------------------------------
# Parameter init (deterministic, synthetic BERT + classifier head)
# ---------------------------------------------------------------------------
def init_params(key):
    keys = iter(jax.random.split(key, 64))

    def w(shape, std=0.02):
        return jax.random.normal(next(keys), shape, jnp.float32) * std

    scale = 1.0 / float(np.sqrt(DH))

    wqkv, bqkv, wo, bo = [], [], [], []
    ln1_g, ln1_b, w1, b1, w2, b2, ln2_g, ln2_b = [], [], [], [], [], [], [], []
    for _ in range(L):
        wq, wk, wv = w((H, H)), w((H, H)), w((H, H))
        bq = jnp.zeros((H,), jnp.float32)
        bk = jnp.zeros((H,), jnp.float32)
        bv = jnp.zeros((H,), jnp.float32)
        # Fold the 1/sqrt(DH) attention scale into the Q projection.
        wqkv.append(jnp.concatenate([wq * scale, wk, wv], axis=1))       # (H, 3H)
        bqkv.append(jnp.concatenate([bq * scale, bk, bv])[None, :])      # (1, 3H)
        wo.append(w((H, H)))
        bo.append(jnp.zeros((1, H), jnp.float32))
        ln1_g.append(jnp.ones((1, H), jnp.float32))
        ln1_b.append(jnp.zeros((1, H), jnp.float32))
        w1.append(w((H, I)))
        b1.append(jnp.zeros((1, I), jnp.float32))
        w2.append(w((I, H)))
        b2.append(jnp.zeros((1, H), jnp.float32))
        ln2_g.append(jnp.ones((1, H), jnp.float32))
        ln2_b.append(jnp.zeros((1, H), jnp.float32))

    fc_w = w((H, NUM_CLASSES))                                 # nn.Linear(hidden, 3)
    fc_b = jnp.zeros((NUM_CLASSES,), jnp.float32)
    fc_w_pad = jnp.zeros((H, NPAD), jnp.float32).at[:, :NUM_CLASSES].set(fc_w)
    fc_b_pad = jnp.zeros((1, NPAD), jnp.float32).at[0, :NUM_CLASSES].set(fc_b)

    return {
        "tok_emb": w((VOCAB, H)),
        "seg_emb": w((NTYPES, H)),
        "pos_emb": w((S, H)),
        "emb_ln_g": jnp.ones((1, H), jnp.float32),
        "emb_ln_b": jnp.zeros((1, H), jnp.float32),
        "wqkv": jnp.stack(wqkv), "bqkv": jnp.stack(bqkv),
        "wo": jnp.stack(wo), "bo": jnp.stack(bo),
        "ln1_g": jnp.stack(ln1_g), "ln1_b": jnp.stack(ln1_b),
        "w1": jnp.stack(w1), "b1": jnp.stack(b1),
        "w2": jnp.stack(w2), "b2": jnp.stack(b2),
        "ln2_g": jnp.stack(ln2_g), "ln2_b": jnp.stack(ln2_b),
        "pool_w": w((H, H)),
        "pool_b": jnp.zeros((1, H), jnp.float32),
        "fc_w_pad": fc_w_pad,
        "fc_b_pad": fc_b_pad,
    }


# ---------------------------------------------------------------------------
# Forward pass: embedding gather in JAX glue, everything else in the fused kernel
# ---------------------------------------------------------------------------
def multiclass_forward(params, batch_token, batch_segment, batch_attention_mask):
    # Embedding gathers (glue).
    emb = (params["tok_emb"][batch_token]
           + params["seg_emb"][batch_segment]
           + params["pos_emb"][None, :, :])                    # (B, S, H)
    x = emb.reshape(B * S, H)

    # Additive attention mask: 0 where attended, -1e9 where masked.
    mask_add = (1.0 - batch_attention_mask.astype(jnp.float32))[:, None, :] * -1e9  # (B,1,S)

    # Single fused pallas_call; no grid — whole arrays resident in VMEM
    # (~70 KB weights + ~2 KB activations, fits every TPU generation).
    logits_pad = pl.pallas_call(
        fused_bert_head_kernel,
        out_shape=jax.ShapeDtypeStruct((B, NPAD), jnp.float32),
    )(x, mask_add,
      params["emb_ln_g"], params["emb_ln_b"],
      params["wqkv"], params["bqkv"], params["wo"], params["bo"],
      params["ln1_g"], params["ln1_b"],
      params["w1"], params["b1"], params["w2"], params["b2"],
      params["ln2_g"], params["ln2_b"],
      params["pool_w"], params["pool_b"],
      params["fc_w_pad"], params["fc_b_pad"])

    return logits_pad[:, :NUM_CLASSES]                         # (B, num_classes)


if __name__ == "__main__":
    key = jax.random.PRNGKey(0)
    pkey, tkey = jax.random.split(key)
    params = init_params(pkey)

    batch_token = jax.random.randint(tkey, (B, S), 0, VOCAB, dtype=jnp.int32)
    batch_segment = jnp.zeros((B, S), jnp.int32)
    batch_attention_mask = jnp.ones((B, S), jnp.int32)

    fwd = jax.jit(multiclass_forward)
    logits = fwd(params, batch_token, batch_segment, batch_attention_mask)
    logits = jax.block_until_ready(logits)

    assert logits.shape == (B, NUM_CLASSES)
    assert logits.dtype == jnp.float32
    assert bool(jnp.all(jnp.isfinite(logits)))
    print("KERNEL_OK")
</pallas_src>

<mosaic_0001>
module attributes {stable_mosaic.version = 11 : i64} {
  func.func @fused_bert_head_kernel(%arg0: memref<16x32xf32, #tpu.memory_space<vmem>>, %arg1: memref<2x1x8xf32, #tpu.memory_space<vmem>>, %arg2: memref<1x32xf32, #tpu.memory_space<vmem>>, %arg3: memref<1x32xf32, #tpu.memory_space<vmem>>, %arg4: memref<2x32x96xf32, #tpu.memory_space<vmem>>, %arg5: memref<2x1x96xf32, #tpu.memory_space<vmem>>, %arg6: memref<2x32x32xf32, #tpu.memory_space<vmem>>, %arg7: memref<2x1x32xf32, #tpu.memory_space<vmem>>, %arg8: memref<2x1x32xf32, #tpu.memory_space<vmem>>, %arg9: memref<2x1x32xf32, #tpu.memory_space<vmem>>, %arg10: memref<2x32x64xf32, #tpu.memory_space<vmem>>, %arg11: memref<2x1x64xf32, #tpu.memory_space<vmem>>, %arg12: memref<2x64x32xf32, #tpu.memory_space<vmem>>, %arg13: memref<2x1x32xf32, #tpu.memory_space<vmem>>, %arg14: memref<2x1x32xf32, #tpu.memory_space<vmem>>, %arg15: memref<2x1x32xf32, #tpu.memory_space<vmem>>, %arg16: memref<32x32xf32, #tpu.memory_space<vmem>>, %arg17: memref<1x32xf32, #tpu.memory_space<vmem>>, %arg18: memref<32x128xf32, #tpu.memory_space<vmem>>, %arg19: memref<1x128xf32, #tpu.memory_space<vmem>>, %arg20: memref<2x128xf32, #tpu.memory_space<vmem>>) attributes {dimension_semantics = [], scalar_prefetch = 0 : i64, scratch_operands = 0 : i64, tpu.core_type = #tpu.core_type<tc>} {
    %c0 = arith.constant 0 : index
    %c0_0 = arith.constant 0 : index
    %c0_1 = arith.constant 0 : index
    %0 = vector.load %arg1[%c0, %c0_0, %c0_1] : memref<2x1x8xf32, #tpu.memory_space<vmem>>, vector<2x1x8xf32>
    %c0_2 = arith.constant 0 : index
    %c0_3 = arith.constant 0 : index
    %1 = vector.load %arg0[%c0_2, %c0_3] : memref<16x32xf32, #tpu.memory_space<vmem>>, vector<16x32xf32>
    %c0_4 = arith.constant 0 : index
    %c0_5 = arith.constant 0 : index
    %2 = vector.load %arg2[%c0_4, %c0_5] : memref<1x32xf32, #tpu.memory_space<vmem>>, vector<1x32xf32>
    %c0_6 = arith.constant 0 : index
    %c0_7 = arith.constant 0 : index
    %3 = vector.load %arg3[%c0_6, %c0_7] : memref<1x32xf32, #tpu.memory_space<vmem>>, vector<1x32xf32>
    %cst = arith.constant dense<0.000000e+00> : vector<16xf32>
    %4 = vector.multi_reduction <add>, %1, %cst [1] : vector<16x32xf32> to vector<16xf32>
    %5 = vector.shape_cast %4 : vector<16xf32> to vector<16x1xf32>
    %cst_8 = arith.constant 3.200000e+01 : f32
    %6 = vector.broadcast %cst_8 : f32 to vector<16x1xf32>
    %7 = arith.divf %5, %6 : vector<16x1xf32>
    %8 = vector.broadcast %7 : vector<16x1xf32> to vector<16x32xf32>
    %9 = arith.subf %1, %8 : vector<16x32xf32>
    %10 = arith.mulf %9, %9 : vector<16x32xf32>
    %cst_9 = arith.constant dense<0.000000e+00> : vector<16xf32>
    %11 = vector.multi_reduction <add>, %10, %cst_9 [1] : vector<16x32xf32> to vector<16xf32>
    %12 = vector.shape_cast %11 : vector<16xf32> to vector<16x1xf32>
    %cst_10 = arith.constant 3.200000e+01 : f32
    %13 = vector.broadcast %cst_10 : f32 to vector<16x1xf32>
    %14 = arith.divf %12, %13 : vector<16x1xf32>
    %15 = vector.broadcast %7 : vector<16x1xf32> to vector<16x32xf32>
    %16 = arith.subf %1, %15 : vector<16x32xf32>
    %cst_11 = arith.constant 9.99999996E-13 : f32
    %17 = vector.broadcast %cst_11 : f32 to vector<16x1xf32>
    %18 = arith.addf %14, %17 : vector<16x1xf32>
    %19 = math.rsqrt %18 : vector<16x1xf32>
    %20 = vector.broadcast %19 : vector<16x1xf32> to vector<16x32xf32>
    %21 = arith.mulf %16, %20 : vector<16x32xf32>
    %22 = vector.broadcast %2 : vector<1x32xf32> to vector<16x32xf32>
    %23 = arith.mulf %21, %22 : vector<16x32xf32>
    %24 = vector.broadcast %3 : vector<1x32xf32> to vector<16x32xf32>
    %25 = arith.addf %23, %24 : vector<16x32xf32>
    %c0_12 = arith.constant 0 : index
    %c0_13 = arith.constant 0 : index
    %c0_14 = arith.constant 0 : index
    %26 = vector.load %arg4[%c0_12, %c0_13, %c0_14] : memref<2x32x96xf32, #tpu.memory_space<vmem>>, vector<1x32x96xf32>
    %27 = vector.shape_cast %26 : vector<1x32x96xf32> to vector<32x96xf32>
    %cst_15 = arith.constant dense<0.000000e+00> : vector<16x96xf32>
    %28 = tpu.matmul %25, %27, %cst_15 {dimension_numbers = #tpu.dot_dimension_numbers<[1], [0], [0], [1], [0, 0, 1, 1], [], []>} : vector<16x32xf32>, vector<32x96xf32>, vector<16x96xf32> -> vector<16x96xf32>
    %c0_16 = arith.constant 0 : index
    %c0_17 = arith.constant 0 : index
    %c0_18 = arith.constant 0 : index
    %29 = vector.load %arg5[%c0_16, %c0_17, %c0_18] : memref<2x1x96xf32, #tpu.memory_space<vmem>>, vector<1x1x96xf32>
    %30 = vector.shape_cast %29 : vector<1x1x96xf32> to vector<1x96xf32>
    %31 = vector.broadcast %30 : vector<1x96xf32> to vector<16x96xf32>
    %32 = arith.addf %28, %31 : vector<16x96xf32>
    %33 = vector.extract_strided_slice %32 {offsets = [0, 0], sizes = [16, 32], strides = [1, 1]} : vector<16x96xf32> to vector<16x32xf32>
    %34 = vector.shape_cast %33 : vector<16x32xf32> to vector<2x8x32xf32>
    %35 = vector.extract_strided_slice %32 {offsets = [0, 32], sizes = [16, 32], strides = [1, 1]} : vector<16x96xf32> to vector<16x32xf32>
    %36 = vector.shape_cast %35 : vector<16x32xf32> to vector<2x8x32xf32>
    %37 = vector.extract_strided_slice %32 {offsets = [0, 64], sizes = [16, 32], strides = [1, 1]} : vector<16x96xf32> to vector<16x32xf32>
    %38 = vector.shape_cast %37 : vector<16x32xf32> to vector<2x8x32xf32>
    %c0_19 = arith.constant 0 : index
    %c0_20 = arith.constant 0 : index
    %c0_21 = arith.constant 0 : index
    %39 = vector.load %arg6[%c0_19, %c0_20, %c0_21] : memref<2x32x32xf32, #tpu.memory_space<vmem>>, vector<1x32x32xf32>
    %40 = vector.shape_cast %39 : vector<1x32x32xf32> to vector<32x32xf32>
    %cst_22 = arith.constant 0.000000e+00 : f32
    %41 = vector.broadcast %cst_22 : f32 to vector<16x32xf32>
    %42 = vector.extract_strided_slice %34 {offsets = [0, 0, 0], sizes = [2, 8, 16], strides = [1, 1, 1]} : vector<2x8x32xf32> to vector<2x8x16xf32>
    %43 = vector.extract_strided_slice %36 {offsets = [0, 0, 0], sizes = [2, 8, 16], strides = [1, 1, 1]} : vector<2x8x32xf32> to vector<2x8x16xf32>
    %44 = vector.extract_strided_slice %38 {offsets = [0, 0, 0], sizes = [2, 8, 16], strides = [1, 1, 1]} : vector<2x8x32xf32> to vector<2x8x16xf32>
    "tpu.trace_start"() <{level = 10 : i32, message = "bqd,bkd->bqk"}> : () -> ()
    %cst_23 = arith.constant dense<0.000000e+00> : vector<2x8x8xf32>
    %45 = tpu.matmul %42, %43, %cst_23 {dimension_numbers = #tpu.dot_dimension_numbers<[2], [2], [1], [1], [0, 0, 0, 1, 1, 1], [0], [0]>} : vector<2x8x16xf32>, vector<2x8x16xf32>, vector<2x8x8xf32> -> vector<2x8x8xf32>
    "tpu.trace_stop"() : () -> ()
    %46 = vector.broadcast %0 : vector<2x1x8xf32> to vector<2x8x8xf32>
    %47 = arith.addf %45, %46 : vector<2x8x8xf32>
    %cst_24 = arith.constant dense<0xFF800000> : vector<2x8xf32>
    %48 = vector.multi_reduction <maximumf>, %47, %cst_24 [2] : vector<2x8x8xf32> to vector<2x8xf32>
    %49 = vector.shape_cast %48 : vector<2x8xf32> to vector<2x8x1xf32>
    %50 = vector.broadcast %49 : vector<2x8x1xf32> to vector<2x8x8xf32>
    %51 = arith.subf %47, %50 : vector<2x8x8xf32>
    %52 = math.exp %51 : vector<2x8x8xf32>
    %cst_25 = arith.constant dense<0.000000e+00> : vector<2x8xf32>
    %53 = vector.multi_reduction <add>, %52, %cst_25 [2] : vector<2x8x8xf32> to vector<2x8xf32>
    %54 = vector.shape_cast %53 : vector<2x8xf32> to vector<2x8x1xf32>
    %55 = vector.broadcast %54 : vector<2x8x1xf32> to vector<2x8x8xf32>
    %56 = arith.divf %52, %55 : vector<2x8x8xf32>
    "tpu.trace_start"() <{level = 10 : i32, message = "bqk,bkd->bqd"}> : () -> ()
    %cst_26 = arith.constant dense<0.000000e+00> : vector<2x8x16xf32>
    %57 = tpu.matmul %56, %44, %cst_26 {dimension_numbers = #tpu.dot_dimension_numbers<[2], [1], [1], [2], [0, 0, 0, 1, 1, 2], [0], [0]>} : vector<2x8x8xf32>, vector<2x8x16xf32>, vector<2x8x16xf32> -> vector<2x8x16xf32>
    "tpu.trace_stop"() : () -> ()
    %58 = vector.shape_cast %57 : vector<2x8x16xf32> to vector<16x16xf32>
    %59 = vector.extract_strided_slice %40 {offsets = [0, 0], sizes = [16, 32], strides = [1, 1]} : vector<32x32xf32> to vector<16x32xf32>
    %cst_27 = arith.constant dense<0.000000e+00> : vector<16x32xf32>
    %60 = tpu.matmul %58, %59, %cst_27 {dimension_numbers = #tpu.dot_dimension_numbers<[1], [0], [0], [1], [0, 0, 1, 1], [], []>} : vector<16x16xf32>, vector<16x32xf32>, vector<16x32xf32> -> vector<16x32xf32>
    %61 = arith.addf %41, %60 : vector<16x32xf32>
    %62 = vector.extract_strided_slice %34 {offsets = [0, 0, 16], sizes = [2, 8, 16], strides = [1, 1, 1]} : vector<2x8x32xf32> to vector<2x8x16xf32>
    %63 = vector.extract_strided_slice %36 {offsets = [0, 0, 16], sizes = [2, 8, 16], strides = [1, 1, 1]} : vector<2x8x32xf32> to vector<2x8x16xf32>
    %64 = vector.extract_strided_slice %38 {offsets = [0, 0, 16], sizes = [2, 8, 16], strides = [1, 1, 1]} : vector<2x8x32xf32> to vector<2x8x16xf32>
    "tpu.trace_start"() <{level = 10 : i32, message = "bqd,bkd->bqk"}> : () -> ()
    %cst_28 = arith.constant dense<0.000000e+00> : vector<2x8x8xf32>
    %65 = tpu.matmul %62, %63, %cst_28 {dimension_numbers = #tpu.dot_dimension_numbers<[2], [2], [1], [1], [0, 0, 0, 1, 1, 1], [0], [0]>} : vector<2x8x16xf32>, vector<2x8x16xf32>, vector<2x8x8xf32> -> vector<2x8x8xf32>
    "tpu.trace_stop"() : () -> ()
    %66 = vector.broadcast %0 : vector<2x1x8xf32> to vector<2x8x8xf32>
    %67 = arith.addf %65, %66 : vector<2x8x8xf32>
    %cst_29 = arith.constant dense<0xFF800000> : vector<2x8xf32>
    %68 = vector.multi_reduction <maximumf>, %67, %cst_29 [2] : vector<2x8x8xf32> to vector<2x8xf32>
    %69 = vector.shape_cast %68 : vector<2x8xf32> to vector<2x8x1xf32>
    %70 = vector.broadcast %69 : vector<2x8x1xf32> to vector<2x8x8xf32>
    %71 = arith.subf %67, %70 : vector<2x8x8xf32>
    %72 = math.exp %71 : vector<2x8x8xf32>
    %cst_30 = arith.constant dense<0.000000e+00> : vector<2x8xf32>
    %73 = vector.multi_reduction <add>, %72, %cst_30 [2] : vector<2x8x8xf32> to vector<2x8xf32>
    %74 = vector.shape_cast %73 : vector<2x8xf32> to vector<2x8x1xf32>
    %75 = vector.broadcast %74 : vector<2x8x1xf32> to vector<2x8x8xf32>
    %76 = arith.divf %72, %75 : vector<2x8x8xf32>
    "tpu.trace_start"() <{level = 10 : i32, message = "bqk,bkd->bqd"}> : () -> ()
    %cst_31 = arith.constant dense<0.000000e+00> : vector<2x8x16xf32>
    %77 = tpu.matmul %76, %64, %cst_31 {dimension_numbers = #tpu.dot_dimension_numbers<[2], [1], [1], [2], [0, 0, 0, 1, 1, 2], [0], [0]>} : vector<2x8x8xf32>, vector<2x8x16xf32>, vector<2x8x16xf32> -> vector<2x8x16xf32>
    "tpu.trace_stop"() : () -> ()
    %78 = vector.shape_cast %77 : vector<2x8x16xf32> to vector<16x16xf32>
    %79 = vector.extract_strided_slice %40 {offsets = [16, 0], sizes = [16, 32], strides = [1, 1]} : vector<32x32xf32> to vector<16x32xf32>
    %cst_32 = arith.constant dense<0.000000e+00> : vector<16x32xf32>
    %80 = tpu.matmul %78, %79, %cst_32 {dimension_numbers = #tpu.dot_dimension_numbers<[1], [0], [0], [1], [0, 0, 1, 1], [], []>} : vector<16x16xf32>, vector<16x32xf32>, vector<16x32xf32> -> vector<16x32xf32>
    %81 = arith.addf %61, %80 : vector<16x32xf32>
    %c0_33 = arith.constant 0 : index
    %c0_34 = arith.constant 0 : index
    %c0_35 = arith.constant 0 : index
    %82 = vector.load %arg7[%c0_33, %c0_34, %c0_35] : memref<2x1x32xf32, #tpu.memory_space<vmem>>, vector<1x1x32xf32>
    %83 = vector.shape_cast %82 : vector<1x1x32xf32> to vector<1x32xf32>
    %84 = vector.broadcast %83 : vector<1x32xf32> to vector<16x32xf32>
    %85 = arith.addf %81, %84 : vector<16x32xf32>
    %86 = arith.addf %85, %25 : vector<16x32xf32>
    %c0_36 = arith.constant 0 : index
    %c0_37 = arith.constant 0 : index
    %c0_38 = arith.constant 0 : index
    %87 = vector.load %arg8[%c0_36, %c0_37, %c0_38] : memref<2x1x32xf32, #tpu.memory_space<vmem>>, vector<1x1x32xf32>
    %88 = vector.shape_cast %87 : vector<1x1x32xf32> to vector<1x32xf32>
    %c0_39 = arith.constant 0 : index
    %c0_40 = arith.constant 0 : index
    %c0_41 = arith.constant 0 : index
    %89 = vector.load %arg9[%c0_39, %c0_40, %c0_41] : memref<2x1x32xf32, #tpu.memory_space<vmem>>, vector<1x1x32xf32>
    %90 = vector.shape_cast %89 : vector<1x1x32xf32> to vector<1x32xf32>
    %cst_42 = arith.constant dense<0.000000e+00> : vector<16xf32>
    %91 = vector.multi_reduction <add>, %86, %cst_42 [1] : vector<16x32xf32> to vector<16xf32>
    %92 = vector.shape_cast %91 : vector<16xf32> to vector<16x1xf32>
    %cst_43 = arith.constant 3.200000e+01 : f32
    %93 = vector.broadcast %cst_43 : f32 to vector<16x1xf32>
    %94 = arith.divf %92, %93 : vector<16x1xf32>
    %95 = vector.broadcast %94 : vector<16x1xf32> to vector<16x32xf32>
    %96 = arith.subf %86, %95 : vector<16x32xf32>
    %97 = arith.mulf %96, %96 : vector<16x32xf32>
    %cst_44 = arith.constant dense<0.000000e+00> : vector<16xf32>
    %98 = vector.multi_reduction <add>, %97, %cst_44 [1] : vector<16x32xf32> to vector<16xf32>
    %99 = vector.shape_cast %98 : vector<16xf32> to vector<16x1xf32>
    %cst_45 = arith.constant 3.200000e+01 : f32
    %100 = vector.broadcast %cst_45 : f32 to vector<16x1xf32>
    %101 = arith.divf %99, %100 : vector<16x1xf32>
    %102 = vector.broadcast %94 : vector<16x1xf32> to vector<16x32xf32>
    %103 = arith.subf %86, %102 : vector<16x32xf32>
    %cst_46 = arith.constant 9.99999996E-13 : f32
    %104 = vector.broadcast %cst_46 : f32 to vector<16x1xf32>
    %105 = arith.addf %101, %104 : vector<16x1xf32>
    %106 = math.rsqrt %105 : vector<16x1xf32>
    %107 = vector.broadcast %106 : vector<16x1xf32> to vector<16x32xf32>
    %108 = arith.mulf %103, %107 : vector<16x32xf32>
    %109 = vector.broadcast %88 : vector<1x32xf32> to vector<16x32xf32>
    %110 = arith.mulf %108, %109 : vector<16x32xf32>
    %111 = vector.broadcast %90 : vector<1x32xf32> to vector<16x32xf32>
    %112 = arith.addf %110, %111 : vector<16x32xf32>
    %c0_47 = arith.constant 0 : index
    %c0_48 = arith.constant 0 : index
    %c0_49 = arith.constant 0 : index
    %113 = vector.load %arg10[%c0_47, %c0_48, %c0_49] : memref<2x32x64xf32, #tpu.memory_space<vmem>>, vector<1x32x64xf32>
    %114 = vector.shape_cast %113 : vector<1x32x64xf32> to vector<32x64xf32>
    %cst_50 = arith.constant dense<0.000000e+00> : vector<16x64xf32>
    %115 = tpu.matmul %112, %114, %cst_50 {dimension_numbers = #tpu.dot_dimension_numbers<[1], [0], [0], [1], [0, 0, 1, 1], [], []>} : vector<16x32xf32>, vector<32x64xf32>, vector<16x64xf32> -> vector<16x64xf32>
    %c0_51 = arith.constant 0 : index
    %c0_52 = arith.constant 0 : index
    %c0_53 = arith.constant 0 : index
    %116 = vector.load %arg11[%c0_51, %c0_52, %c0_53] : memref<2x1x64xf32, #tpu.memory_space<vmem>>, vector<1x1x64xf32>
    %117 = vector.shape_cast %116 : vector<1x1x64xf32> to vector<1x64xf32>
    %118 = vector.broadcast %117 : vector<1x64xf32> to vector<16x64xf32>
    %119 = arith.addf %115, %118 : vector<16x64xf32>
    %120 = arith.mulf %119, %119 : vector<16x64xf32>
    %121 = arith.mulf %119, %120 : vector<16x64xf32>
    %cst_54 = arith.constant 4.471500e-02 : f32
    %122 = vector.broadcast %cst_54 : f32 to vector<16x64xf32>
    %123 = arith.mulf %122, %121 : vector<16x64xf32>
    %124 = arith.addf %119, %123 : vector<16x64xf32>
    %cst_55 = arith.constant 0.797884583 : f32
    %125 = vector.broadcast %cst_55 : f32 to vector<16x64xf32>
    %126 = arith.mulf %125, %124 : vector<16x64xf32>
    %127 = math.tanh %126 : vector<16x64xf32>
    %cst_56 = arith.constant 1.000000e+00 : f32
    %128 = vector.broadcast %cst_56 : f32 to vector<16x64xf32>
    %129 = arith.addf %128, %127 : vector<16x64xf32>
    %cst_57 = arith.constant 5.000000e-01 : f32
    %130 = vector.broadcast %cst_57 : f32 to vector<16x64xf32>
    %131 = arith.mulf %130, %129 : vector<16x64xf32>
    %132 = arith.mulf %119, %131 : vector<16x64xf32>
    %c0_58 = arith.constant 0 : index
    %c0_59 = arith.constant 0 : index
    %c0_60 = arith.constant 0 : index
    %133 = vector.load %arg12[%c0_58, %c0_59, %c0_60] : memref<2x64x32xf32, #tpu.memory_space<vmem>>, vector<1x64x32xf32>
    %134 = vector.shape_cast %133 : vector<1x64x32xf32> to vector<64x32xf32>
    %cst_61 = arith.constant dense<0.000000e+00> : vector<16x32xf32>
    %135 = tpu.matmul %132, %134, %cst_61 {dimension_numbers = #tpu.dot_dimension_numbers<[1], [0], [0], [1], [0, 0, 1, 1], [], []>} : vector<16x64xf32>, vector<64x32xf32>, vector<16x32xf32> -> vector<16x32xf32>
    %c0_62 = arith.constant 0 : index
    %c0_63 = arith.constant 0 : index
    %c0_64 = arith.constant 0 : index
    %136 = vector.load %arg13[%c0_62, %c0_63, %c0_64] : memref<2x1x32xf32, #tpu.memory_space<vmem>>, vector<1x1x32xf32>
    %137 = vector.shape_cast %136 : vector<1x1x32xf32> to vector<1x32xf32>
    %138 = vector.broadcast %137 : vector<1x32xf32> to vector<16x32xf32>
    %139 = arith.addf %135, %138 : vector<16x32xf32>
    %140 = arith.addf %139, %112 : vector<16x32xf32>
    %c0_65 = arith.constant 0 : index
    %c0_66 = arith.constant 0 : index
    %c0_67 = arith.constant 0 : index
    %141 = vector.load %arg14[%c0_65, %c0_66, %c0_67] : memref<2x1x32xf32, #tpu.memory_space<vmem>>, vector<1x1x32xf32>
    %142 = vector.shape_cast %141 : vector<1x1x32xf32> to vector<1x32xf32>
    %c0_68 = arith.constant 0 : index
    %c0_69 = arith.constant 0 : index
    %c0_70 = arith.constant 0 : index
    %143 = vector.load %arg15[%c0_68, %c0_69, %c0_70] : memref<2x1x32xf32, #tpu.memory_space<vmem>>, vector<1x1x32xf32>
    %144 = vector.shape_cast %143 : vector<1x1x32xf32> to vector<1x32xf32>
    %cst_71 = arith.constant dense<0.000000e+00> : vector<16xf32>
    %145 = vector.multi_reduction <add>, %140, %cst_71 [1] : vector<16x32xf32> to vector<16xf32>
    %146 = vector.shape_cast %145 : vector<16xf32> to vector<16x1xf32>
    %cst_72 = arith.constant 3.200000e+01 : f32
    %147 = vector.broadcast %cst_72 : f32 to vector<16x1xf32>
    %148 = arith.divf %146, %147 : vector<16x1xf32>
    %149 = vector.broadcast %148 : vector<16x1xf32> to vector<16x32xf32>
    %150 = arith.subf %140, %149 : vector<16x32xf32>
    %151 = arith.mulf %150, %150 : vector<16x32xf32>
    %cst_73 = arith.constant dense<0.000000e+00> : vector<16xf32>
    %152 = vector.multi_reduction <add>, %151, %cst_73 [1] : vector<16x32xf32> to vector<16xf32>
    %153 = vector.shape_cast %152 : vector<16xf32> to vector<16x1xf32>
    %cst_74 = arith.constant 3.200000e+01 : f32
    %154 = vector.broadcast %cst_74 : f32 to vector<16x1xf32>
    %155 = arith.divf %153, %154 : vector<16x1xf32>
    %156 = vector.broadcast %148 : vector<16x1xf32> to vector<16x32xf32>
    %157 = arith.subf %140, %156 : vector<16x32xf32>
    %cst_75 = arith.constant 9.99999996E-13 : f32
    %158 = vector.broadcast %cst_75 : f32 to vector<16x1xf32>
    %159 = arith.addf %155, %158 : vector<16x1xf32>
    %160 = math.rsqrt %159 : vector<16x1xf32>
    %161 = vector.broadcast %160 : vector<16x1xf32> to vector<16x32xf32>
    %162 = arith.mulf %157, %161 : vector<16x32xf32>
    %163 = vector.broadcast %142 : vector<1x32xf32> to vector<16x32xf32>
    %164 = arith.mulf %162, %163 : vector<16x32xf32>
    %165 = vector.broadcast %144 : vector<1x32xf32> to vector<16x32xf32>
    %166 = arith.addf %164, %165 : vector<16x32xf32>
    %c1 = arith.constant 1 : index
    %c0_76 = arith.constant 0 : index
    %c0_77 = arith.constant 0 : index
    %167 = vector.load %arg4[%c1, %c0_76, %c0_77] : memref<2x32x96xf32, #tpu.memory_space<vmem>>, vector<1x32x96xf32>
    %168 = vector.shape_cast %167 : vector<1x32x96xf32> to vector<32x96xf32>
    %cst_78 = arith.constant dense<0.000000e+00> : vector<16x96xf32>
    %169 = tpu.matmul %166, %168, %cst_78 {dimension_numbers = #tpu.dot_dimension_numbers<[1], [0], [0], [1], [0, 0, 1, 1], [], []>} : vector<16x32xf32>, vector<32x96xf32>, vector<16x96xf32> -> vector<16x96xf32>
    %c1_79 = arith.constant 1 : index
    %c0_80 = arith.constant 0 : index
    %c0_81 = arith.constant 0 : index
    %170 = vector.load %arg5[%c1_79, %c0_80, %c0_81] : memref<2x1x96xf32, #tpu.memory_space<vmem>>, vector<1x1x96xf32>
    %171 = vector.shape_cast %170 : vector<1x1x96xf32> to vector<1x96xf32>
    %172 = vector.broadcast %171 : vector<1x96xf32> to vector<16x96xf32>
    %173 = arith.addf %169, %172 : vector<16x96xf32>
    %174 = vector.extract_strided_slice %173 {offsets = [0, 0], sizes = [16, 32], strides = [1, 1]} : vector<16x96xf32> to vector<16x32xf32>
    %175 = vector.shape_cast %174 : vector<16x32xf32> to vector<2x8x32xf32>
    %176 = vector.extract_strided_slice %173 {offsets = [0, 32], sizes = [16, 32], strides = [1, 1]} : vector<16x96xf32> to vector<16x32xf32>
    %177 = vector.shape_cast %176 : vector<16x32xf32> to vector<2x8x32xf32>
    %178 = vector.extract_strided_slice %173 {offsets = [0, 64], sizes = [16, 32], strides = [1, 1]} : vector<16x96xf32> to vector<16x32xf32>
    %179 = vector.shape_cast %178 : vector<16x32xf32> to vector<2x8x32xf32>
    %c1_82 = arith.constant 1 : index
    %c0_83 = arith.constant 0 : index
    %c0_84 = arith.constant 0 : index
    %180 = vector.load %arg6[%c1_82, %c0_83, %c0_84] : memref<2x32x32xf32, #tpu.memory_space<vmem>>, vector<1x32x32xf32>
    %181 = vector.shape_cast %180 : vector<1x32x32xf32> to vector<32x32xf32>
    %cst_85 = arith.constant 0.000000e+00 : f32
    %182 = vector.broadcast %cst_85 : f32 to vector<16x32xf32>
    %183 = vector.extract_strided_slice %175 {offsets = [0, 0, 0], sizes = [2, 8, 16], strides = [1, 1, 1]} : vector<2x8x32xf32> to vector<2x8x16xf32>
    %184 = vector.extract_strided_slice %177 {offsets = [0, 0, 0], sizes = [2, 8, 16], strides = [1, 1, 1]} : vector<2x8x32xf32> to vector<2x8x16xf32>
    %185 = vector.extract_strided_slice %179 {offsets = [0, 0, 0], sizes = [2, 8, 16], strides = [1, 1, 1]} : vector<2x8x32xf32> to vector<2x8x16xf32>
    "tpu.trace_start"() <{level = 10 : i32, message = "bqd,bkd->bqk"}> : () -> ()
    %cst_86 = arith.constant dense<0.000000e+00> : vector<2x8x8xf32>
    %186 = tpu.matmul %183, %184, %cst_86 {dimension_numbers = #tpu.dot_dimension_numbers<[2], [2], [1], [1], [0, 0, 0, 1, 1, 1], [0], [0]>} : vector<2x8x16xf32>, vector<2x8x16xf32>, vector<2x8x8xf32> -> vector<2x8x8xf32>
    "tpu.trace_stop"() : () -> ()
    %187 = vector.broadcast %0 : vector<2x1x8xf32> to vector<2x8x8xf32>
    %188 = arith.addf %186, %187 : vector<2x8x8xf32>
    %cst_87 = arith.constant dense<0xFF800000> : vector<2x8xf32>
    %189 = vector.multi_reduction <maximumf>, %188, %cst_87 [2] : vector<2x8x8xf32> to vector<2x8xf32>
    %190 = vector.shape_cast %189 : vector<2x8xf32> to vector<2x8x1xf32>
    %191 = vector.broadcast %190 : vector<2x8x1xf32> to vector<2x8x8xf32>
    %192 = arith.subf %188, %191 : vector<2x8x8xf32>
    %193 = math.exp %192 : vector<2x8x8xf32>
    %cst_88 = arith.constant dense<0.000000e+00> : vector<2x8xf32>
    %194 = vector.multi_reduction <add>, %193, %cst_88 [2] : vector<2x8x8xf32> to vector<2x8xf32>
    %195 = vector.shape_cast %194 : vector<2x8xf32> to vector<2x8x1xf32>
    %196 = vector.broadcast %195 : vector<2x8x1xf32> to vector<2x8x8xf32>
    %197 = arith.divf %193, %196 : vector<2x8x8xf32>
    "tpu.trace_start"() <{level = 10 : i32, message = "bqk,bkd->bqd"}> : () -> ()
    %cst_89 = arith.constant dense<0.000000e+00> : vector<2x8x16xf32>
    %198 = tpu.matmul %197, %185, %cst_89 {dimension_numbers = #tpu.dot_dimension_numbers<[2], [1], [1], [2], [0, 0, 0, 1, 1, 2], [0], [0]>} : vector<2x8x8xf32>, vector<2x8x16xf32>, vector<2x8x16xf32> -> vector<2x8x16xf32>
    "tpu.trace_stop"() : () -> ()
    %199 = vector.shape_cast %198 : vector<2x8x16xf32> to vector<16x16xf32>
    %200 = vector.extract_strided_slice %181 {offsets = [0, 0], sizes = [16, 32], strides = [1, 1]} : vector<32x32xf32> to vector<16x32xf32>
    %cst_90 = arith.constant dense<0.000000e+00> : vector<16x32xf32>
    %201 = tpu.matmul %199, %200, %cst_90 {dimension_numbers = #tpu.dot_dimension_numbers<[1], [0], [0], [1], [0, 0, 1, 1], [], []>} : vector<16x16xf32>, vector<16x32xf32>, vector<16x32xf32> -> vector<16x32xf32>
    %202 = arith.addf %182, %201 : vector<16x32xf32>
    %203 = vector.extract_strided_slice %175 {offsets = [0, 0, 16], sizes = [2, 8, 16], strides = [1, 1, 1]} : vector<2x8x32xf32> to vector<2x8x16xf32>
    %204 = vector.extract_strided_slice %177 {offsets = [0, 0, 16], sizes = [2, 8, 16], strides = [1, 1, 1]} : vector<2x8x32xf32> to vector<2x8x16xf32>
    %205 = vector.extract_strided_slice %179 {offsets = [0, 0, 16], sizes = [2, 8, 16], strides = [1, 1, 1]} : vector<2x8x32xf32> to vector<2x8x16xf32>
    "tpu.trace_start"() <{level = 10 : i32, message = "bqd,bkd->bqk"}> : () -> ()
    %cst_91 = arith.constant dense<0.000000e+00> : vector<2x8x8xf32>
    %206 = tpu.matmul %203, %204, %cst_91 {dimension_numbers = #tpu.dot_dimension_numbers<[2], [2], [1], [1], [0, 0, 0, 1, 1, 1], [0], [0]>} : vector<2x8x16xf32>, vector<2x8x16xf32>, vector<2x8x8xf32> -> vector<2x8x8xf32>
    "tpu.trace_stop"() : () -> ()
    %207 = vector.broadcast %0 : vector<2x1x8xf32> to vector<2x8x8xf32>
    %208 = arith.addf %206, %207 : vector<2x8x8xf32>
    %cst_92 = arith.constant dense<0xFF800000> : vector<2x8xf32>
    %209 = vector.multi_reduction <maximumf>, %208, %cst_92 [2] : vector<2x8x8xf32> to vector<2x8xf32>
    %210 = vector.shape_cast %209 : vector<2x8xf32> to vector<2x8x1xf32>
    %211 = vector.broadcast %210 : vector<2x8x1xf32> to vector<2x8x8xf32>
    %212 = arith.subf %208, %211 : vector<2x8x8xf32>
    %213 = math.exp %212 : vector<2x8x8xf32>
    %cst_93 = arith.constant dense<0.000000e+00> : vector<2x8xf32>
    %214 = vector.multi_reduction <add>, %213, %cst_93 [2] : vector<2x8x8xf32> to vector<2x8xf32>
    %215 = vector.shape_cast %214 : vector<2x8xf32> to vector<2x8x1xf32>
    %216 = vector.broadcast %215 : vector<2x8x1xf32> to vector<2x8x8xf32>
    %217 = arith.divf %213, %216 : vector<2x8x8xf32>
    "tpu.trace_start"() <{level = 10 : i32, message = "bqk,bkd->bqd"}> : () -> ()
    %cst_94 = arith.constant dense<0.000000e+00> : vector<2x8x16xf32>
    %218 = tpu.matmul %217, %205, %cst_94 {dimension_numbers = #tpu.dot_dimension_numbers<[2], [1], [1], [2], [0, 0, 0, 1, 1, 2], [0], [0]>} : vector<2x8x8xf32>, vector<2x8x16xf32>, vector<2x8x16xf32> -> vector<2x8x16xf32>
    "tpu.trace_stop"() : () -> ()
    %219 = vector.shape_cast %218 : vector<2x8x16xf32> to vector<16x16xf32>
    %220 = vector.extract_strided_slice %181 {offsets = [16, 0], sizes = [16, 32], strides = [1, 1]} : vector<32x32xf32> to vector<16x32xf32>
    %cst_95 = arith.constant dense<0.000000e+00> : vector<16x32xf32>
    %221 = tpu.matmul %219, %220, %cst_95 {dimension_numbers = #tpu.dot_dimension_numbers<[1], [0], [0], [1], [0, 0, 1, 1], [], []>} : vector<16x16xf32>, vector<16x32xf32>, vector<16x32xf32> -> vector<16x32xf32>
    %222 = arith.addf %202, %221 : vector<16x32xf32>
    %c1_96 = arith.constant 1 : index
    %c0_97 = arith.constant 0 : index
    %c0_98 = arith.constant 0 : index
    %223 = vector.load %arg7[%c1_96, %c0_97, %c0_98] : memref<2x1x32xf32, #tpu.memory_space<vmem>>, vector<1x1x32xf32>
    %224 = vector.shape_cast %223 : vector<1x1x32xf32> to vector<1x32xf32>
    %225 = vector.broadcast %224 : vector<1x32xf32> to vector<16x32xf32>
    %226 = arith.addf %222, %225 : vector<16x32xf32>
    %227 = arith.addf %226, %166 : vector<16x32xf32>
    %c1_99 = arith.constant 1 : index
    %c0_100 = arith.constant 0 : index
    %c0_101 = arith.constant 0 : index
    %228 = vector.load %arg8[%c1_99, %c0_100, %c0_101] : memref<2x1x32xf32, #tpu.memory_space<vmem>>, vector<1x1x32xf32>
    %229 = vector.shape_cast %228 : vector<1x1x32xf32> to vector<1x32xf32>
    %c1_102 = arith.constant 1 : index
    %c0_103 = arith.constant 0 : index
    %c0_104 = arith.constant 0 : index
    %230 = vector.load %arg9[%c1_102, %c0_103, %c0_104] : memref<2x1x32xf32, #tpu.memory_space<vmem>>, vector<1x1x32xf32>
    %231 = vector.shape_cast %230 : vector<1x1x32xf32> to vector<1x32xf32>
    %cst_105 = arith.constant dense<0.000000e+00> : vector<16xf32>
    %232 = vector.multi_reduction <add>, %227, %cst_105 [1] : vector<16x32xf32> to vector<16xf32>
    %233 = vector.shape_cast %232 : vector<16xf32> to vector<16x1xf32>
    %cst_106 = arith.constant 3.200000e+01 : f32
    %234 = vector.broadcast %cst_106 : f32 to vector<16x1xf32>
    %235 = arith.divf %233, %234 : vector<16x1xf32>
    %236 = vector.broadcast %235 : vector<16x1xf32> to vector<16x32xf32>
    %237 = arith.subf %227, %236 : vector<16x32xf32>
    %238 = arith.mulf %237, %237 : vector<16x32xf32>
    %cst_107 = arith.constant dense<0.000000e+00> : vector<16xf32>
    %239 = vector.multi_reduction <add>, %238, %cst_107 [1] : vector<16x32xf32> to vector<16xf32>
    %240 = vector.shape_cast %239 : vector<16xf32> to vector<16x1xf32>
    %cst_108 = arith.constant 3.200000e+01 : f32
    %241 = vector.broadcast %cst_108 : f32 to vector<16x1xf32>
    %242 = arith.divf %240, %241 : vector<16x1xf32>
    %243 = vector.broadcast %235 : vector<16x1xf32> to vector<16x32xf32>
    %244 = arith.subf %227, %243 : vector<16x32xf32>
    %cst_109 = arith.constant 9.99999996E-13 : f32
    %245 = vector.broadcast %cst_109 : f32 to vector<16x1xf32>
    %246 = arith.addf %242, %245 : vector<16x1xf32>
    %247 = math.rsqrt %246 : vector<16x1xf32>
    %248 = vector.broadcast %247 : vector<16x1xf32> to vector<16x32xf32>
    %249 = arith.mulf %244, %248 : vector<16x32xf32>
    %250 = vector.broadcast %229 : vector<1x32xf32> to vector<16x32xf32>
    %251 = arith.mulf %249, %250 : vector<16x32xf32>
    %252 = vector.broadcast %231 : vector<1x32xf32> to vector<16x32xf32>
    %253 = arith.addf %251, %252 : vector<16x32xf32>
    %c1_110 = arith.constant 1 : index
    %c0_111 = arith.constant 0 : index
    %c0_112 = arith.constant 0 : index
    %254 = vector.load %arg10[%c1_110, %c0_111, %c0_112] : memref<2x32x64xf32, #tpu.memory_space<vmem>>, vector<1x32x64xf32>
    %255 = vector.shape_cast %254 : vector<1x32x64xf32> to vector<32x64xf32>
    %cst_113 = arith.constant dense<0.000000e+00> : vector<16x64xf32>
    %256 = tpu.matmul %253, %255, %cst_113 {dimension_numbers = #tpu.dot_dimension_numbers<[1], [0], [0], [1], [0, 0, 1, 1], [], []>} : vector<16x32xf32>, vector<32x64xf32>, vector<16x64xf32> -> vector<16x64xf32>
    %c1_114 = arith.constant 1 : index
    %c0_115 = arith.constant 0 : index
    %c0_116 = arith.constant 0 : index
    %257 = vector.load %arg11[%c1_114, %c0_115, %c0_116] : memref<2x1x64xf32, #tpu.memory_space<vmem>>, vector<1x1x64xf32>
    %258 = vector.shape_cast %257 : vector<1x1x64xf32> to vector<1x64xf32>
    %259 = vector.broadcast %258 : vector<1x64xf32> to vector<16x64xf32>
    %260 = arith.addf %256, %259 : vector<16x64xf32>
    %261 = arith.mulf %260, %260 : vector<16x64xf32>
    %262 = arith.mulf %260, %261 : vector<16x64xf32>
    %cst_117 = arith.constant 4.471500e-02 : f32
    %263 = vector.broadcast %cst_117 : f32 to vector<16x64xf32>
    %264 = arith.mulf %263, %262 : vector<16x64xf32>
    %265 = arith.addf %260, %264 : vector<16x64xf32>
    %cst_118 = arith.constant 0.797884583 : f32
    %266 = vector.broadcast %cst_118 : f32 to vector<16x64xf32>
    %267 = arith.mulf %266, %265 : vector<16x64xf32>
    %268 = math.tanh %267 : vector<16x64xf32>
    %cst_119 = arith.constant 1.000000e+00 : f32
    %269 = vector.broadcast %cst_119 : f32 to vector<16x64xf32>
    %270 = arith.addf %269, %268 : vector<16x64xf32>
    %cst_120 = arith.constant 5.000000e-01 : f32
    %271 = vector.broadcast %cst_120 : f32 to vector<16x64xf32>
    %272 = arith.mulf %271, %270 : vector<16x64xf32>
    %273 = arith.mulf %260, %272 : vector<16x64xf32>
    %c1_121 = arith.constant 1 : index
    %c0_122 = arith.constant 0 : index
    %c0_123 = arith.constant 0 : index
    %274 = vector.load %arg12[%c1_121, %c0_122, %c0_123] : memref<2x64x32xf32, #tpu.memory_space<vmem>>, vector<1x64x32xf32>
    %275 = vector.shape_cast %274 : vector<1x64x32xf32> to vector<64x32xf32>
    %cst_124 = arith.constant dense<0.000000e+00> : vector<16x32xf32>
    %276 = tpu.matmul %273, %275, %cst_124 {dimension_numbers = #tpu.dot_dimension_numbers<[1], [0], [0], [1], [0, 0, 1, 1], [], []>} : vector<16x64xf32>, vector<64x32xf32>, vector<16x32xf32> -> vector<16x32xf32>
    %c1_125 = arith.constant 1 : index
    %c0_126 = arith.constant 0 : index
    %c0_127 = arith.constant 0 : index
    %277 = vector.load %arg13[%c1_125, %c0_126, %c0_127] : memref<2x1x32xf32, #tpu.memory_space<vmem>>, vector<1x1x32xf32>
    %278 = vector.shape_cast %277 : vector<1x1x32xf32> to vector<1x32xf32>
    %279 = vector.broadcast %278 : vector<1x32xf32> to vector<16x32xf32>
    %280 = arith.addf %276, %279 : vector<16x32xf32>
    %281 = arith.addf %280, %253 : vector<16x32xf32>
    %c1_128 = arith.constant 1 : index
    %c0_129 = arith.constant 0 : index
    %c0_130 = arith.constant 0 : index
    %282 = vector.load %arg14[%c1_128, %c0_129, %c0_130] : memref<2x1x32xf32, #tpu.memory_space<vmem>>, vector<1x1x32xf32>
    %283 = vector.shape_cast %282 : vector<1x1x32xf32> to vector<1x32xf32>
    %c1_131 = arith.constant 1 : index
    %c0_132 = arith.constant 0 : index
    %c0_133 = arith.constant 0 : index
    %284 = vector.load %arg15[%c1_131, %c0_132, %c0_133] : memref<2x1x32xf32, #tpu.memory_space<vmem>>, vector<1x1x32xf32>
    %285 = vector.shape_cast %284 : vector<1x1x32xf32> to vector<1x32xf32>
    %cst_134 = arith.constant dense<0.000000e+00> : vector<16xf32>
    %286 = vector.multi_reduction <add>, %281, %cst_134 [1] : vector<16x32xf32> to vector<16xf32>
    %287 = vector.shape_cast %286 : vector<16xf32> to vector<16x1xf32>
    %cst_135 = arith.constant 3.200000e+01 : f32
    %288 = vector.broadcast %cst_135 : f32 to vector<16x1xf32>
    %289 = arith.divf %287, %288 : vector<16x1xf32>
    %290 = vector.broadcast %289 : vector<16x1xf32> to vector<16x32xf32>
    %291 = arith.subf %281, %290 : vector<16x32xf32>
    %292 = arith.mulf %291, %291 : vector<16x32xf32>
    %cst_136 = arith.constant dense<0.000000e+00> : vector<16xf32>
    %293 = vector.multi_reduction <add>, %292, %cst_136 [1] : vector<16x32xf32> to vector<16xf32>
    %294 = vector.shape_cast %293 : vector<16xf32> to vector<16x1xf32>
    %cst_137 = arith.constant 3.200000e+01 : f32
    %295 = vector.broadcast %cst_137 : f32 to vector<16x1xf32>
    %296 = arith.divf %294, %295 : vector<16x1xf32>
    %297 = vector.broadcast %289 : vector<16x1xf32> to vector<16x32xf32>
    %298 = arith.subf %281, %297 : vector<16x32xf32>
    %cst_138 = arith.constant 9.99999996E-13 : f32
    %299 = vector.broadcast %cst_138 : f32 to vector<16x1xf32>
    %300 = arith.addf %296, %299 : vector<16x1xf32>
    %301 = math.rsqrt %300 : vector<16x1xf32>
    %302 = vector.broadcast %301 : vector<16x1xf32> to vector<16x32xf32>
    %303 = arith.mulf %298, %302 : vector<16x32xf32>
    %304 = vector.broadcast %283 : vector<1x32xf32> to vector<16x32xf32>
    %305 = arith.mulf %303, %304 : vector<16x32xf32>
    %306 = vector.broadcast %285 : vector<1x32xf32> to vector<16x32xf32>
    %307 = arith.addf %305, %306 : vector<16x32xf32>
    %308 = vector.extract_strided_slice %307 {offsets = [0, 0], sizes = [1, 32], strides = [1, 1]} : vector<16x32xf32> to vector<1x32xf32>
    %309 = vector.extract_strided_slice %307 {offsets = [8, 0], sizes = [1, 32], strides = [1, 1]} : vector<16x32xf32> to vector<1x32xf32>
    %310 = tpu.concatenate %308, %309 in 0 : vector<1x32xf32>, vector<1x32xf32> -> vector<2x32xf32>
    %c0_139 = arith.constant 0 : index
    %c0_140 = arith.constant 0 : index
    %311 = vector.load %arg16[%c0_139, %c0_140] : memref<32x32xf32, #tpu.memory_space<vmem>>, vector<32x32xf32>
    %cst_141 = arith.constant dense<0.000000e+00> : vector<2x32xf32>
    %312 = tpu.matmul %310, %311, %cst_141 {dimension_numbers = #tpu.dot_dimension_numbers<[1], [0], [0], [1], [0, 0, 1, 1], [], []>} : vector<2x32xf32>, vector<32x32xf32>, vector<2x32xf32> -> vector<2x32xf32>
    %c0_142 = arith.constant 0 : index
    %c0_143 = arith.constant 0 : index
    %313 = vector.load %arg17[%c0_142, %c0_143] : memref<1x32xf32, #tpu.memory_space<vmem>>, vector<1x32xf32>
    %314 = vector.broadcast %313 : vector<1x32xf32> to vector<2x32xf32>
    %315 = arith.addf %312, %314 : vector<2x32xf32>
    %316 = math.tanh %315 : vector<2x32xf32>
    %c0_144 = arith.constant 0 : index
    %c0_145 = arith.constant 0 : index
    %317 = vector.load %arg18[%c0_144, %c0_145] : memref<32x128xf32, #tpu.memory_space<vmem>>, vector<32x128xf32>
    %cst_146 = arith.constant dense<0.000000e+00> : vector<2x128xf32>
    %318 = tpu.matmul %316, %317, %cst_146 {dimension_numbers = #tpu.dot_dimension_numbers<[1], [0], [0], [1], [0, 0, 1, 1], [], []>} : vector<2x32xf32>, vector<32x128xf32>, vector<2x128xf32> -> vector<2x128xf32>
    %c0_147 = arith.constant 0 : index
    %c0_148 = arith.constant 0 : index
    %319 = vector.load %arg19[%c0_147, %c0_148] : memref<1x128xf32, #tpu.memory_space<vmem>>, vector<1x128xf32>
    %320 = vector.broadcast %319 : vector<1x128xf32> to vector<2x128xf32>
    %321 = arith.addf %318, %320 : vector<2x128xf32>
    %c0_149 = arith.constant 0 : index
    %c0_150 = arith.constant 0 : index
    %322 = vector.load %arg20[%c0_149, %c0_150] : memref<2x128xf32, #tpu.memory_space<vmem>>, vector<2x128xf32>
    tpu.vector_store %arg20[%c0_149, %c0_150], %321 {strides = array<i32>} : memref<2x128xf32, #tpu.memory_space<vmem>>, vector<2x128xf32>,
    return
  }
}

</mosaic_0001>

<bundles_post_ra>
// kernel: multiclass_forward.1
= control target key start
LH: loop header
LB: loop body
LE: loop exit
PB: predicated region body
PF: predicated region fallthrough
CT: control target
= control target key end

     0   :  { %s3842_s0 = inlined_call_operand.vmem [shape: f32[16,32], index: 0, kind: input, shape index: {}]   ;;  %s3843_s1 = inlined_call_operand.vmem [shape: f32[2,1,8], index: 1, kind: input, shape index: {}]   ;;  %s3844_s2 = inlined_call_operand.vmem [shape: f32[1,32], index: 2, kind: input, shape index: {}]   ;;  %s3845_s3 = inlined_call_operand.vmem [shape: f32[1,32], index: 3, kind: input, shape index: {}]   ;;  %s3846_s4 = inlined_call_operand.vmem [shape: f32[2,32,96], index: 4, kind: input, shape index: {}]   ;;  %s3847_s5 = inlined_call_operand.vmem [shape: f32[2,1,96], index: 5, kind: input, shape index: {}]   ;;  %s3848_s6 = inlined_call_operand.vmem [shape: f32[2,32,32], index: 6, kind: input, shape index: {}]   ;;  %s3849_s7 = inlined_call_operand.vmem [shape: f32[2,1,32], index: 7, kind: input, shape index: {}]   ;;  %s3850_s8 = inlined_call_operand.vmem [shape: f32[2,1,32], index: 8, kind: input, shape index: {}]   ;;  %s3851_s9 = inlined_call_operand.vmem [shape: f32[2,1,32], index: 9, kind: input, shape index: {}]   ;;  %s3852_s10 = inlined_call_operand.vmem [shape: f32[2,32,64], index: 10, kind: input, shape index: {}]   ;;  %s3853_s11 = inlined_call_operand.vmem [shape: f32[2,1,64], index: 11, kind: input, shape index: {}]   ;;  %s3854_s12 = inlined_call_operand.vmem [shape: f32[2,64,32], index: 12, kind: input, shape index: {}]   ;;  %s3855_s13 = inlined_call_operand.vmem [shape: f32[2,1,32], index: 13, kind: input, shape index: {}]   ;;  %s3856_s14 = inlined_call_operand.vmem [shape: f32[2,1,32], index: 14, kind: input, shape index: {}]   ;;  %s3857_s15 = inlined_call_operand.vmem [shape: f32[2,1,32], index: 15, kind: input, shape index: {}]   ;;  %s3858_s16 = inlined_call_operand.vmem [shape: f32[32,32], index: 16, kind: input, shape index: {}]   ;;  %s3859_s17 = inlined_call_operand.vmem [shape: f32[1,32], index: 17, kind: input, shape index: {}]   ;;  %s3860_s18 = inlined_call_operand.vmem [shape: f32[32,128], index: 18, kind: input, shape index: {}]   ;;  %s3861_s19 = inlined_call_operand.vmem [shape: f32[1,128], index: 19, kind: input, shape index: {}]   ;;  %s3862_s20 = inlined_call_operand.hbm [shape: f32[2,128], index: 20, kind: output, shape index: {}]  }
   0x1   :  { %3866 = sst [smem:[#allocation5_spill]] %s3842_s0 }
   0x2   :  { %3867 = sst [smem:[#allocation6_spill]] %s3843_s1 }
   0x3   :  { %3868 = sst [smem:[#allocation7_spill]] %s3844_s2 }
   0x4   :  { %3869 = sst [smem:[#allocation8_spill]] %s3845_s3 }
   0x5   :  { %3870 = sst [smem:[#allocation9_spill]] %s3846_s4 }
   0x6   :  { %s3871_s23 = sld [smem:[#allocation5_spill]]  ;;  %vm72_vm0 = vcmask 261120  }
   0xc   :  { %v68_v0 = vld [vmem:[%s3871_s23] sm:$0xff]  ;;  %v69_v1 = vld [vmem:[%s3871_s23 + $0x8] sm:$0xff] }
   0xd   :  { %25 = vsyncpa [#allocation3], 0  ;;  %v73_v2 = vsel %vm72_vm0, %v68_v0, 0.0  ;;  %v76_v3 = vsel %vm72_vm0, %v69_v1, 0.0  ;;  %s3872_s26 = sld [smem:[#allocation9_spill]]  ;;  %v3280_v34 = vmov 0.0  }
   0xe   :  { %74 = vadd.xlane.f32.xlu0 %v73_v2  ;;  %s3873_s22 = sld [smem:[#allocation7_spill]]  ;;  %2987 = vmatprep.subr.mxu1 %v3280_v34  ;;  %vm3281_vm1 = vmmov 0   ;;  %v2780_v35 = vld [vmem:[%s3847_s5] ss:$0 sm:$0xff]  ;;  %s3282_s27 = smov 96   ;;  %vm227_vm2 = vcmask 130048  }
   0xf   :  { %s3874_s2 = sld [smem:[#allocation8_spill]]  ;;  %2989 = vmatprep.mubr.msk.f32.mxu1 %vm3281_vm1, %v3280_v34  ;;  %vm379_vm3 = vcmask 64512   ;;  %s3283_s21 = smov 64   ;;  %vm1226_vm4 = vcmask 523264   ;;  %vm2592_vm5 = vcmask 1040384  }
  0x10   :  { %s3875_s29 = sld [smem:[#allocation6_spill]]  ;;  %s3284_s1 = smov 80  }
  0x11   :  { %s3286_s23 = smov 48  }
  0x12   :  { %77 = vadd.xlane.f32.xlu0 %v76_v3 }
  0x13   :  { %v119_v14 = vld [vmem:[%s3872_s26 + $0x18] sm:$0xff]  ;;  %v118_v15 = vld [vmem:[%s3872_s26 + $0x10] sm:$0xff]  ;;  %v117_v16 = vld [vmem:[%s3872_s26 + $0x8] sm:$0xff] }
  0x14   :  { %2976 = vmatprep.subr.mxu0 %v119_v14  ;;  %v116_v17 = vld [vmem:[%s3872_s26] sm:$0xff] }
  0x15   :  { %2977 = vmatpush3.msra.mxu0 %v119_v14  ;;  %v2778_v25 = vld [vmem:[%s3873_s22] ss:$0 sm:$0xff]  ;;  %s3285_s22 = smov 112  }
  0x16   :  { %2978 = vmatprep.subr.mxu0 %v118_v15  ;;  %v2779_v27 = vld [vmem:[%s3874_s2] ss:$0 sm:$0xff]  ;;  %v3467_v46 = vld [vmem:[%s3875_s29 + $0x1] ss:$0 sm:$0xff] }
  0x17   :  { %2979 = vmatpush3.msra.mxu0 %v118_v15  ;;  %v3461_v42 = vld [vmem:[%s3875_s29] ss:$0 sm:$0xff] }
  0x18   :  { %2980 = vmatprep.subr.mxu0 %v117_v16 }
  0x19   :  { %2981 = vmatpush3.msra.mxu0 %v117_v16 }
  0x1a   :  { %2982 = vmatprep.subr.mxu0 %v116_v17 }
  0x1b   :  { %2983 = vmatpush3.msra.mxu0 %v116_v17 }
  0x1c   :  { %3007 = vmatprep.subr.mxu0 %v3280_v34 }
  0x97   :  { %v75_v4 = vpop.xlane.xlu0 %74 }
  0x98   :  { %v80_v5 = vmul.f32 0.03125, %v75_v4 }
  0x9a   :  { %v82_v6 = vsub.f32 %v68_v0, %v80_v5 }
  0x9b   :  { %v78_v7 = vpop.xlane.xlu0 %77 }
  0x9c   :  { %v81_v8 = vmul.f32 0.03125, %v78_v7  ;;  %v84_v9 = vmul.f32 %v82_v6, %v82_v6 }
  0x9e   :  { %v83_v10 = vsub.f32 %v69_v1, %v81_v8  ;;  %v86_v11 = vsel %vm72_vm0, %v84_v9, 0.0 }
  0x9f   :  { %87 = vadd.xlane.f32.xlu1 %v86_v11 }
  0xa0   :  { %v85_v12 = vmul.f32 %v83_v10, %v83_v10 }
  0xa2   :  { %v89_v13 = vsel %vm72_vm0, %v85_v12, 0.0 }
  0xa3   :  { %90 = vadd.xlane.f32.xlu1 %v89_v13 }
 0x128   :  { %v88_v18 = vpop.xlane.xlu1 %87 }
 0x129   :  { %v92_v19 = vmul.f32 0.03125, %v88_v18 }
 0x12b   :  { %v94_v20 = vadd.f32 1e-12, %v92_v19 }
 0x12c   :  { %v91_v21 = vpop.xlane.xlu1 %90 }
 0x12d   :  { %3196 = vrsqrt.f32 %v94_v20  ;;  %v93_v22 = vmul.f32 0.03125, %v91_v21 }
 0x12f   :  { %v95_v23 = vadd.f32 1e-12, %v93_v22 }
 0x131   :  { %3198 = vrsqrt.f32 %v95_v23 }
 0x13a   :  { %v3197_v24 = vpop.eup %3196 }
 0x13b   :  { %v98_v26 = vmul.f32 %v3197_v24, %v82_v6 }
 0x13d   :  { %v106_v28 = vmul.f32 %v2778_v25, %v98_v26 }
 0x13e   :  { %v3199_v29 = vpop.eup %3198 }
 0x13f   :  { %v99_v30 = vmul.f32 %v3199_v29, %v83_v10  ;;  %v3421_v31 = vadd.f32 %v2779_v27, %v106_v28 }
 0x141   :  { %v107_v32 = vmul.f32 %v2778_v25, %v99_v30  ;;  %2984 = vmatprep.mubr.msk.f32.mxu0 %vm72_vm0, %v3421_v31 }
 0x143   :  { %v3425_v33 = vadd.f32 %v2779_v27, %v107_v32 }
 0x145   :  { %2985 = vmatmul.mubr.msk.f32.vlgmr.msra.gmra.mxu0 %vm72_vm0, %v3425_v33 }
 0x146   :  { %3009 = vmatprep.mubr.msk.f32.mxu0 %vm3281_vm1, %v3280_v34 }
 0x205   :  { %v2986_v36 = vpop.f32.mrf.mxu0 }
 0x206   :  { %v3438_v37 = vadd.f32 %v2986_v36, %v2780_v35  ;;  %v209_v36 = vld [vmem:[%s3848_s6 + $0x8] sm:$0xff] }
 0x207   :  { %v199_v38 = vpop.f32.mrf.mxu0 }
 0x208   :  { %v3440_v39 = vadd.f32 %v2780_v35, %v199_v38  ;;  %303 = vrot.lane.b32.xlu1 %v3438_v37, %s3282_s27 }
 0x20a   :  { %225 = vrot.lane.b32.xlu0 %v3440_v39, %s3282_s27 }
 0x27a   :  { %v304_v41 = vpop.permute.xlu1 %303 }
 0x27c   :  { %v226_v40 = vpop.permute.xlu0 %225 }
 0x27d   :  { %2988 = vmatpush3.xpose.msk.msra.mxu1 %vm227_vm2, %v226_v40 }
 0x27e   :  { %2992 = vmatprep.subr.mxu1 %v3280_v34 }
 0x280   :  { %2990 = vmatmul.mubr.msk.f32.vlgmr.msra.gmra.mxu1 %vm227_vm2, %v3440_v39 }
 0x281   :  { %2993 = vmatpush3.xpose.msk.msra.mxu1 %vm227_vm2, %v304_v41  ;;  %2994 = vmatprep.mubr.msk.f32.mxu1 %vm3281_vm1, %v3280_v34 }
 0x282   :  { %2997 = vmatprep.subr.mxu1 %v3280_v34 }
 0x284   :  { %2995 = vmatmul.mubr.msk.f32.vlgmr.msra.gmra.mxu1 %vm227_vm2, %v3438_v37 }
 0x285   :  { %2999 = vmatprep.mubr.msk.f32.mxu1 %vm3281_vm1, %v3280_v34 }
 0x340   :  { %v298_v43 = vpop.f32.mrf.mxu1 }
 0x341   :  { %v299_v44 = vadd.f32 %v3461_v42, %v298_v43 }
 0x342   :  { %v2991_v45 = vpop.f32.mrf.mxu1 }
 0x343   :  { %v380_v47 = vsel %vm379_vm3, %v299_v44, -inf }
 0x344   :  { %v375_v48 = vpop.f32.mrf.mxu1  ;;  %381 = vmax.xlane.f32.xlu1 %v380_v47  ;;  %v211_v47 = vld [vmem:[%s3848_s6 + $0x18] sm:$0xff] }
 0x345   :  { %v376_v49 = vadd.f32 %v3467_v46, %v375_v48  ;;  %v210_v48 = vld [vmem:[%s3848_s6 + $0x10] sm:$0xff] }
 0x346   :  { %v2996_v50 = vpop.f32.mrf.mxu1 }
 0x347   :  { %v383_v51 = vsel %vm379_vm3, %v376_v49, -inf }
 0x348   :  { %384 = vmax.xlane.f32.xlu0 %v383_v51 }
 0x355   :  { %478 = vrot.lane.b32.xlu1 %v3438_v37, %s3283_s21 }
 0x359   :  { %556 = vrot.lane.b32.xlu1 %v3440_v39, %s3284_s1 }
 0x35d   :  { %634 = vrot.lane.b32.xlu1 %v3438_v37, %s3284_s1 }
 0x3cd   :  { %v382_v52 = vpop.xlane.xlu1 %381 }
 0x3ce   :  { %v386_v53 = vsub.f32 %v299_v44, %v382_v52 }
 0x3d0   :  { %v388_v54 = vmul.f32 1.442695, %v386_v53 }
 0x3d1   :  { %v385_v55 = vpop.xlane.xlu0 %384  ;;  %v479_v56 = vpop.permute.xlu1 %478 }
 0x3d2   :  { %3200 = vpow2.f32 %v388_v54  ;;  %v387_v57 = vsub.f32 %v376_v49, %v385_v55  ;;  %v2801_v55 = vld [vmem:[%s3849_s7] ss:$0 sm:$0xff] }
 0x3d4   :  { %v390_v58 = vmul.f32 1.442695, %v387_v57 }
 0x3d5   :  { %v557_v59 = vpop.permute.xlu1 %556 }
 0x3d6   :  { %3202 = vpow2.f32 %v390_v58  ;;  %3008 = vmatpush3.xpose.msk.msra.mxu0 %vm227_vm2, %v557_v59 }
 0x3d7   :  { %3017 = vmatprep.subr.mxu0 %v3280_v34 }
 0x3d9   :  { %v635_v0 = vpop.permute.xlu1 %634 }
 0x3df   :  { %v3201_v60 = vpop.eup %3200 }
 0x3e0   :  { %v392_v61 = vsel %vm379_vm3, %v3201_v60, 0.0 }
 0x3e1   :  { %393 = vadd.xlane.f32.xlu0 %v392_v61 }
 0x3e3   :  { %v3203_v62 = vpop.eup %3202 }
 0x3e4   :  { %v395_v63 = vsel %vm379_vm3, %v3203_v62, 0.0 }
 0x3e5   :  { %396 = vadd.xlane.f32.xlu1 %v395_v63 }
 0x3f6   :  { %632 = vrot.lane.b32.xlu1 %v3438_v37, %s3285_s22 }
 0x3f7   :  { %402 = vrot.lane.b32.xlu0 %v3440_v39, %s3283_s21 }
 0x3fb   :  { %554 = vrot.lane.b32.xlu0 %v3440_v39, %s3285_s22 }
 0x46a   :  { %v394_v1 = vpop.xlane.xlu0 %393 }
 0x46b   :  { %3204 = vrcp.f32 %v394_v1 }
 0x46e   :  { %v403_v2 = vpop.permute.xlu0 %402  ;;  %v397_v3 = vpop.xlane.xlu1 %396 }
 0x46f   :  { %3206 = vrcp.f32 %v397_v3  ;;  %2998 = vmatpush3.msra.mxu1 %v403_v2 }
 0x470   :  { %3002 = vmatprep.subr.mxu1 %v3280_v34 }
 0x472   :  { %v555_v4 = vpop.permute.xlu0 %554  ;;  %v633_v9 = vpop.permute.xlu1 %632 }
 0x473   :  { %3010 = vmatmul.mubr.msk.f32.vlgmr.msra.gmra.mxu0 %vm227_vm2, %v555_v4 }
 0x474   :  { %3019 = vmatprep.mubr.msk.f32.mxu0 %vm3281_vm1, %v3280_v34 }
 0x478   :  { %v3205_v5 = vpop.eup %3204 }
 0x479   :  { %v399_v6 = vmul.f32 %v3205_v5, %v3201_v60 }
 0x47b   :  { %3000 = vmatmul.mubr.msk.f32.vlgmr.msra.gmra.mxu1 %vm379_vm3, %v399_v6 }
 0x47c   :  { %v3207_v7 = vpop.eup %3206  ;;  %3003 = vmatpush3.msra.mxu1 %v479_v56  ;;  %3004 = vmatprep.mubr.msk.f32.mxu1 %vm3281_vm1, %v3280_v34 }
 0x47d   :  { %3012 = vmatprep.subr.mxu1 %v3280_v34  ;;  %v401_v8 = vmul.f32 %v3207_v7, %v3203_v62 }
 0x47f   :  { %3005 = vmatmul.mubr.msk.f32.vlgmr.msra.gmra.mxu1 %vm379_vm3, %v401_v8 }
 0x480   :  { %3013 = vmatpush3.xpose.msk.msra.mxu1 %vm227_vm2, %v635_v0  ;;  %3014 = vmatprep.mubr.msk.f32.mxu1 %vm3281_vm1, %v3280_v34 }
 0x481   :  { %3022 = vmatprep.subr.mxu1 %v3280_v34 }
 0x483   :  { %3015 = vmatmul.mubr.msk.f32.vlgmr.msra.gmra.mxu1 %vm227_vm2, %v633_v9 }
 0x484   :  { %3024 = vmatprep.mubr.msk.f32.mxu1 %vm3281_vm1, %v3280_v34 }
 0x533   :  { %v628_v10 = vpop.f32.mrf.mxu0 }
 0x534   :  { %v629_v11 = vadd.f32 %v3461_v42, %v628_v10 }
 0x535   :  { %v3011_v12 = vpop.f32.mrf.mxu0 }
 0x536   :  { %v710_v13 = vsel %vm379_vm3, %v629_v11, -inf  ;;  %v1102_v12 = vld [vmem:[%s3852_s10 + $0x8] sm:$0xff] }
 0x537   :  { %711 = vmax.xlane.f32.xlu0 %v710_v13  ;;  %v1101_v13 = vld [vmem:[%s3852_s10] sm:$0xff] }
 0x53b   :  { %v474_v14 = vpop.f32.mrf.mxu1 }
 0x53d   :  { %v3001_v15 = vpop.f32.mrf.mxu1 }
 0x53f   :  { %v550_v16 = vpop.f32.mrf.mxu1 }
 0x541   :  { %v3006_v17 = vpop.f32.mrf.mxu1 }
 0x543   :  { %v706_v18 = vpop.f32.mrf.mxu1 }
 0x544   :  { %v707_v19 = vadd.f32 %v3467_v46, %v706_v18 }
 0x545   :  { %v3016_v20 = vpop.f32.mrf.mxu1 }
 0x546   :  { %v713_v21 = vsel %vm379_vm3, %v707_v19, -inf }
 0x547   :  { %714 = vmax.xlane.f32.xlu1 %v713_v21  ;;  %v2802_v21 = vld [vmem:[%s3850_s8] ss:$0 sm:$0xff] }
 0x558   :  { %808 = vrot.lane.b32.xlu1 %v3438_v37, %s3286_s23 }
 0x5c0   :  { %v712_v22 = vpop.xlane.xlu0 %711 }
 0x5c1   :  { %v716_v23 = vsub.f32 %v629_v11, %v712_v22  ;;  %v1103_v11 = vld [vmem:[%s3852_s10 + $0x10] sm:$0xff] }
 0x5c3   :  { %v718_v24 = vmul.f32 1.442695, %v716_v23 }
 0x5c5   :  { %3208 = vpow2.f32 %v718_v24 }
 0x5d0   :  { %v715_v25 = vpop.xlane.xlu1 %714 }
 0x5d1   :  { %v717_v26 = vsub.f32 %v707_v19, %v715_v25 }
 0x5d2   :  { %v3209_v27 = vpop.eup %3208 }
 0x5d3   :  { %v720_v28 = vmul.f32 1.442695, %v717_v26  ;;  %v722_v29 = vsel %vm379_vm3, %v3209_v27, 0.0  ;;  %v2803_v26 = vld [vmem:[%s3851_s9] ss:$0 sm:$0xff] }
 0x5d4   :  { %723 = vadd.xlane.f32.xlu0 %v722_v29  ;;  %v809_v30 = vpop.permute.xlu1 %808 }
 0x5d5   :  { %3210 = vpow2.f32 %v720_v28  ;;  %3023 = vmatpush3.msra.mxu1 %v809_v30  ;;  %v1218_v30 = vld [vmem:[%s3854_s12 + $0x38] sm:$0xff] }
 0x5d6   :  { %3034 = vmatprep.subr.mxu1 %v209_v36 }
 0x5e2   :  { %v3211_v32 = vpop.eup %3210 }
 0x5e3   :  { %v725_v35 = vsel %vm379_vm3, %v3211_v32, 0.0 }
 0x5e4   :  { %726 = vadd.xlane.f32.xlu0 %v725_v35  ;;  %v1216_v35 = vld [vmem:[%s3854_s12 + $0x28] sm:$0xff] }
 0x5fa   :  { %732 = vrot.lane.b32.xlu0 %v3440_v39, %s3286_s23  ;;  %v208_v39 = vld [vmem:[%s3848_s6] sm:$0xff] }
 0x65d   :  { %v724_v37 = vpop.xlane.xlu0 %723 }
 0x65e   :  { %3212 = vrcp.f32 %v724_v37  ;;  %v1214_v37 = vld [vmem:[%s3854_s12 + $0x18] sm:$0xff] }
 0x66b   :  { %v3213_v40 = vpop.eup %3212 }
 0x66c   :  { %v729_v43 = vmul.f32 %v3213_v40, %v3209_v27  ;;  %v1212_v40 = vld [vmem:[%s3854_s12 + $0x8] sm:$0xff] }
 0x66d   :  { %v727_v38 = vpop.xlane.xlu0 %726 }
 0x66e   :  { %3214 = vrcp.f32 %v727_v38  ;;  %v1213_v38 = vld [vmem:[%s3854_s12 + $0x10] sm:$0xff] }
 0x671   :  { %v733_v41 = vpop.permute.xlu0 %732 }
 0x672   :  { %3018 = vmatpush3.msra.mxu0 %v733_v41  ;;  %v1211_v41 = vld [vmem:[%s3854_s12] sm:$0xff] }
 0x673   :  { %3020 = vmatmul.mubr.msk.f32.vlgmr.msra.gmra.mxu0 %vm379_vm3, %v729_v43  ;;  %3027 = vmatprep.subr.mxu0 %v211_v47  ;;  %v2804_v43 = vld [vmem:[%s3853_s11] ss:$0 sm:$0xff] }
 0x674   :  { %3028 = vmatpush3.msra.mxu0 %v211_v47 }
 0x675   :  { %3029 = vmatprep.subr.mxu0 %v210_v48 }
 0x676   :  { %3030 = vmatpush3.msra.mxu0 %v210_v48 }
 0x67b   :  { %v3215_v44 = vpop.eup %3214 }
 0x67c   :  { %v731_v45 = vmul.f32 %v3215_v44, %v3211_v32  ;;  %v1217_v32 = vld [vmem:[%s3854_s12 + $0x30] sm:$0xff] }
 0x67e   :  { %3025 = vmatmul.mubr.msk.f32.vlgmr.msra.gmra.mxu1 %vm379_vm3, %v731_v45 }
 0x67f   :  { %3035 = vmatpush3.msra.mxu1 %v209_v36  ;;  %3038 = vmatprep.mubr.msk.f32.mxu1 %vm227_vm2, %v474_v14  ;;  %v1215_v36 = vld [vmem:[%s3854_s12 + $0x20] sm:$0xff] }
 0x680   :  { %3036 = vmatprep.subr.mxu1 %v208_v39 }
 0x681   :  { %3037 = vmatpush3.msra.mxu1 %v208_v39 }
 0x682   :  { %3039 = vmatmul.mubr.msk.f32.vlgmr.msra.gmra.mxu1 %vm227_vm2, %v550_v16  ;;  %3052 = vmatprep.subr.mxu1 %v1218_v30 }
 0x683   :  { %3053 = vmatpush3.msra.mxu1 %v1218_v30  ;;  %v2810_v30 = vld [vmem:[%s3856_s14] ss:$0 sm:$0xff] }
 0x684   :  { %3054 = vmatprep.subr.mxu1 %v1217_v32 }
 0x685   :  { %3055 = vmatpush3.msra.mxu1 %v1217_v32 }
 0x686   :  { %3056 = vmatprep.subr.mxu1 %v1216_v35 }
 0x687   :  { %3057 = vmatpush3.msra.mxu1 %v1216_v35 }
 0x688   :  { %3058 = vmatprep.subr.mxu1 %v1215_v36 }
 0x689   :  { %3059 = vmatpush3.msra.mxu1 %v1215_v36 }
 0x68a   :  { %3060 = vmatprep.subr.mxu1 %v1214_v37 }
 0x68b   :  { %3061 = vmatpush3.msra.mxu1 %v1214_v37 }
 0x68c   :  { %3062 = vmatprep.subr.mxu1 %v1213_v38 }
 0x68d   :  { %3063 = vmatpush3.msra.mxu1 %v1213_v38  ;;  %v2811_v38 = vld [vmem:[%s3857_s15] ss:$0 sm:$0xff] }
 0x68e   :  { %3064 = vmatprep.subr.mxu1 %v1212_v40 }
 0x68f   :  { %3065 = vmatpush3.msra.mxu1 %v1212_v40 }
 0x690   :  { %3066 = vmatprep.subr.mxu1 %v1211_v41 }
 0x691   :  { %3067 = vmatpush3.msra.mxu1 %v1211_v41 }
 0x692   :  { %3087 = vmatprep.subr.mxu1 %v3280_v34 }
 0x733   :  { %v804_v49 = vpop.f32.mrf.mxu0 }
 0x734   :  { %3031 = vmatprep.mubr.msk.f32.mxu0 %vm227_vm2, %v804_v49 }
 0x735   :  { %v3021_v50 = vpop.f32.mrf.mxu0 }
 0x73e   :  { %v880_v51 = vpop.f32.mrf.mxu1 }
 0x73f   :  { %3032 = vmatmul.mubr.msk.f32.vlgmr.msra.gmra.mxu0 %vm227_vm2, %v880_v51 }
 0x740   :  { %v3026_v52 = vpop.f32.mrf.mxu1 }
 0x742   :  { %v3040_v53 = vpop.f32.mrf.mxu1 }
 0x744   :  { %v1037_v57 = vpop.f32.mrf.mxu1 }
 0x7ff   :  { %v3033_v54 = vpop.f32.mrf.mxu0 }
 0x800   :  { %v1043_v56 = vadd.f32 %v3040_v53, %v3033_v54 }
 0x801   :  { %v956_v58 = vpop.f32.mrf.mxu0 }
 0x802   :  { %v1054_v59 = vadd.f32 %v2801_v55, %v1043_v56  ;;  %v1038_v60 = vadd.f32 %v1037_v57, %v956_v58 }
 0x804   :  { %v1053_v61 = vadd.f32 %v2801_v55, %v1038_v60  ;;  %v1056_v62 = vadd.f32 %v1054_v59, %v3425_v33 }
 0x806   :  { %v1062_v63 = vsel %vm72_vm0, %v1056_v62, 0.0  ;;  %v1055_v0 = vadd.f32 %v1053_v61, %v3421_v31  ;;  %v1104_v31 = vld [vmem:[%s3852_s10 + $0x18] sm:$0xff] }
 0x807   :  { %1063 = vadd.xlane.f32.xlu0 %v1062_v63  ;;  %3041 = vmatprep.subr.mxu0 %v1104_v31 }
 0x808   :  { %v1059_v1 = vsel %vm72_vm0, %v1055_v0, 0.0  ;;  %3042 = vmatpush3.msra.mxu0 %v1104_v31 }
 0x809   :  { %1060 = vadd.xlane.f32.xlu1 %v1059_v1  ;;  %3043 = vmatprep.subr.mxu0 %v1103_v11 }
 0x80a   :  { %3044 = vmatpush3.msra.mxu0 %v1103_v11 }
 0x80b   :  { %3045 = vmatprep.subr.mxu0 %v1102_v12 }
 0x80c   :  { %3046 = vmatpush3.msra.mxu0 %v1102_v12 }
 0x80d   :  { %3047 = vmatprep.subr.mxu0 %v1101_v13 }
 0x80e   :  { %3048 = vmatpush3.msra.mxu0 %v1101_v13 }
 0x890   :  { %v1064_v2 = vpop.xlane.xlu0 %1063 }
 0x891   :  { %v1066_v3 = vmul.f32 0.03125, %v1064_v2  ;;  %v2807_v2 = vld [vmem:[%s3855_s13] ss:$0 sm:$0xff] }
 0x892   :  { %v1061_v4 = vpop.xlane.xlu1 %1060 }
 0x893   :  { %v1068_v5 = vsub.f32 %v1056_v62, %v1066_v3  ;;  %v1065_v6 = vmul.f32 0.03125, %v1061_v4 }
 0x895   :  { %v1067_v7 = vsub.f32 %v1055_v0, %v1065_v6  ;;  %v1070_v8 = vmul.f32 %v1068_v5, %v1068_v5 }
 0x897   :  { %v1074_v9 = vsel %vm72_vm0, %v1070_v8, 0.0  ;;  %v1069_v10 = vmul.f32 %v1067_v7, %v1067_v7 }
 0x898   :  { %1075 = vadd.xlane.f32.xlu1 %v1074_v9 }
 0x899   :  { %v1071_v33 = vsel %vm72_vm0, %v1069_v10, 0.0 }
 0x89a   :  { %1072 = vadd.xlane.f32.xlu0 %v1071_v33 }
 0x921   :  { %v1076_v14 = vpop.xlane.xlu1 %1075 }
 0x922   :  { %v1078_v15 = vmul.f32 0.03125, %v1076_v14 }
 0x923   :  { %v1073_v16 = vpop.xlane.xlu0 %1072 }
 0x924   :  { %v1080_v17 = vadd.f32 1e-12, %v1078_v15  ;;  %v1077_v18 = vmul.f32 0.03125, %v1073_v16 }
 0x926   :  { %3216 = vrsqrt.f32 %v1080_v17  ;;  %v1079_v19 = vadd.f32 1e-12, %v1077_v18 }
 0x928   :  { %3218 = vrsqrt.f32 %v1079_v19  ;;  %v2815_v19 = vld [vmem:[%s3872_s26 + $0x38] sm:$0xff] }
 0x929   :  { %3071 = vmatprep.subr.mxu0 %v2815_v19 }
 0x933   :  { %v3217_v20 = vpop.eup %3216 }
 0x934   :  { %v1084_v22 = vmul.f32 %v3217_v20, %v1068_v5  ;;  %v2814_v20 = vld [vmem:[%s3872_s26 + $0x30] sm:$0xff] }
 0x935   :  { %v3219_v23 = vpop.eup %3218 }
 0x936   :  { %v1083_v24 = vmul.f32 %v3219_v23, %v1067_v7  ;;  %v1092_v25 = vmul.f32 %v2802_v21, %v1084_v22  ;;  %v2812_v22 = vld [vmem:[%s3872_s26 + $0x20] sm:$0xff] }
 0x938   :  { %v1091_v27 = vmul.f32 %v2802_v21, %v1083_v24  ;;  %v1100_v29 = vadd.f32 %v2803_v26, %v1092_v25  ;;  %v2813_v21 = vld [vmem:[%s3872_s26 + $0x28] sm:$0xff] }
 0x93a   :  { %v3559_v28 = vadd.f32 %v2803_v26, %v1091_v27 }
 0x93c   :  { %3049 = vmatprep.mubr.msk.f32.mxu0 %vm72_vm0, %v3559_v28 }
 0x93d   :  { %3050 = vmatmul.mubr.msk.f32.vlgmr.msra.gmra.mxu0 %vm72_vm0, %v1100_v29 }
 0x93e   :  { %3072 = vmatpush3.msra.mxu0 %v2815_v19 }
 0x93f   :  { %3073 = vmatprep.subr.mxu0 %v2814_v20 }
 0x940   :  { %3074 = vmatpush3.msra.mxu0 %v2814_v20 }
 0x941   :  { %3075 = vmatprep.subr.mxu0 %v2813_v21 }
 0x942   :  { %3076 = vmatpush3.msra.mxu0 %v2813_v21 }
 0x943   :  { %3077 = vmatprep.subr.mxu0 %v2812_v22 }
 0x944   :  { %3078 = vmatpush3.msra.mxu0 %v2812_v22 }
 0x945   :  { %3082 = vmatprep.subr.mxu0 %v3280_v34 }
 0x9fd   :  { %v3051_v44 = vpop.f32.mrf.mxu0 }
 0x9fe   :  { %v1190_v45 = vadd.f32 %v3051_v44, %v2804_v43  ;;  %v2817_v44 = vld [vmem:[%s3847_s5 + $0x1] ss:$0 sm:$0xff] }
 0x9ff   :  { %v1184_v39 = vpop.f32.mrf.mxu0 }
 0xa00   :  { %v1194_v47 = vmul.f32 %v1190_v45, %v1190_v45  ;;  %v1185_v48 = vadd.f32 %v2804_v43, %v1184_v39 }
 0xa02   :  { %v1196_v49 = vmul.f32 %v1194_v47, %v1190_v45  ;;  %v1193_v50 = vmul.f32 %v1185_v48, %v1185_v48 }
 0xa04   :  { %v1198_v51 = vmul.f32 0.044715, %v1196_v49  ;;  %v1195_v52 = vmul.f32 %v1193_v50, %v1185_v48 }
 0xa06   :  { %v1200_v53 = vadd.f32 %v1198_v51, %v1190_v45  ;;  %v1197_v54 = vmul.f32 0.044715, %v1195_v52 }
 0xa08   :  { %v1202_v55 = vmul.f32 0.7978846, %v1200_v53  ;;  %v1199_v56 = vadd.f32 %v1197_v54, %v1185_v48 }
 0xa0a   :  { %3220 = vtanh.f32 %v1202_v55  ;;  %v1201_v57 = vmul.f32 0.7978846, %v1199_v56 }
 0xa0c   :  { %3222 = vtanh.f32 %v1201_v57 }
 0xa17   :  { %v3221_v58 = vpop.eup %3220 }
 0xa18   :  { %v1206_v59 = vadd.f32 1.0, %v3221_v58 }
 0xa19   :  { %v3223_v60 = vpop.eup %3222 }
 0xa1a   :  { %v1205_v61 = vadd.f32 1.0, %v3223_v60  ;;  %v1208_v62 = vmul.f32 0.5, %v1206_v59 }
 0xa1c   :  { %v1207_v63 = vmul.f32 0.5, %v1205_v61  ;;  %v1210_v1 = vmul.f32 %v1208_v62, %v1190_v45 }
 0xa1e   :  { %v1209_v0 = vmul.f32 %v1207_v63, %v1185_v48 }
 0xa20   :  { %3068 = vmatprep.mubr.msk.f32.mxu1 %vm1226_vm4, %v1209_v0 }
 0xa21   :  { %3069 = vmatmul.mubr.msk.f32.vlgmr.msra.gmra.mxu1 %vm1226_vm4, %v1210_v1 }
 0xa22   :  { %3089 = vmatprep.mubr.msk.f32.mxu1 %vm3281_vm1, %v3280_v34 }
 0xae1   :  { %v3070_v3 = vpop.f32.mrf.mxu1 }
 0xae2   :  { %v1305_v4 = vadd.f32 %v3070_v3, %v2807_v2 }
 0xae3   :  { %v1299_v5 = vpop.f32.mrf.mxu1 }
 0xae4   :  { %v1300_v6 = vadd.f32 %v2807_v2, %v1299_v5  ;;  %v1309_v7 = vadd.f32 %v1305_v4, %v1100_v29 }
 0xae6   :  { %v1315_v8 = vsel %vm72_vm0, %v1309_v7, 0.0  ;;  %v1308_v9 = vadd.f32 %v1300_v6, %v3559_v28 }
 0xae7   :  { %1316 = vadd.xlane.f32.xlu1 %v1315_v8 }
 0xae8   :  { %v1312_v10 = vsel %vm72_vm0, %v1308_v9, 0.0 }
 0xae9   :  { %1313 = vadd.xlane.f32.xlu0 %v1312_v10 }
 0xb70   :  { %v1317_v33 = vpop.xlane.xlu1 %1316 }
 0xb71   :  { %v1319_v31 = vmul.f32 0.03125, %v1317_v33 }
 0xb72   :  { %v1314_v11 = vpop.xlane.xlu0 %1313 }
 0xb73   :  { %v1321_v12 = vsub.f32 %v1309_v7, %v1319_v31  ;;  %v1318_v13 = vmul.f32 0.03125, %v1314_v11 }
 0xb75   :  { %v1320_v14 = vsub.f32 %v1308_v9, %v1318_v13  ;;  %v1323_v15 = vmul.f32 %v1321_v12, %v1321_v12 }
 0xb77   :  { %v1327_v16 = vsel %vm72_vm0, %v1323_v15, 0.0  ;;  %v1322_v17 = vmul.f32 %v1320_v14, %v1320_v14 }
 0xb78   :  { %1328 = vadd.xlane.f32.xlu1 %v1327_v16 }
 0xb79   :  { %v1324_v18 = vsel %vm72_vm0, %v1322_v17, 0.0 }
 0xb7a   :  { %1325 = vadd.xlane.f32.xlu0 %v1324_v18 }
 0xc01   :  { %v1329_v23 = vpop.xlane.xlu1 %1328 }
 0xc02   :  { %v1331_v24 = vmul.f32 0.03125, %v1329_v23 }
 0xc03   :  { %v1326_v25 = vpop.xlane.xlu0 %1325 }
 0xc04   :  { %v1333_v26 = vadd.f32 1e-12, %v1331_v24  ;;  %v1330_v27 = vmul.f32 0.03125, %v1326_v25 }
 0xc06   :  { %3224 = vrsqrt.f32 %v1333_v26  ;;  %v1332_v28 = vadd.f32 1e-12, %v1330_v27 }
 0xc08   :  { %3226 = vrsqrt.f32 %v1332_v28 }
 0xc13   :  { %v3225_v29 = vpop.eup %3224 }
 0xc14   :  { %v1337_v32 = vmul.f32 %v3225_v29, %v1321_v12 }
 0xc15   :  { %v3227_v35 = vpop.eup %3226 }
 0xc16   :  { %v1336_v36 = vmul.f32 %v3227_v35, %v1320_v14  ;;  %v1345_v37 = vmul.f32 %v2810_v30, %v1337_v32 }
 0xc18   :  { %v1344_v40 = vmul.f32 %v2810_v30, %v1336_v36  ;;  %v3625_v43 = vadd.f32 %v2811_v38, %v1345_v37 }
 0xc1a   :  { %v3623_v41 = vadd.f32 %v2811_v38, %v1344_v40  ;;  %v2821_v40 = vld [vmem:[%s3848_s6 + $0x28] sm:$0xff] }
 0xc1c   :  { %3079 = vmatprep.mubr.msk.f32.mxu0 %vm72_vm0, %v3623_v41 }
 0xc1d   :  { %3080 = vmatmul.mubr.msk.f32.vlgmr.msra.gmra.mxu0 %vm72_vm0, %v3625_v43 }
 0xc1e   :  { %3084 = vmatprep.mubr.msk.f32.mxu0 %vm3281_vm1, %v3280_v34 }
 0xcdd   :  { %v3081_v45 = vpop.f32.mrf.mxu0 }
 0xcde   :  { %v3636_v39 = vadd.f32 %v3081_v45, %v2817_v44 }
 0xcdf   :  { %v1439_v47 = vpop.f32.mrf.mxu0 }
 0xce0   :  { %v3638_v48 = vadd.f32 %v2817_v44, %v1439_v47  ;;  %1531 = vrot.lane.b32.xlu1 %v3636_v39, %s3282_s27 }
 0xce2   :  { %1454 = vrot.lane.b32.xlu0 %v3638_v48, %s3282_s27 }
 0xd52   :  { %v1532_v49 = vpop.permute.xlu1 %1531 }
 0xd53   :  { %3088 = vmatpush3.xpose.msk.msra.mxu1 %vm227_vm2, %v1532_v49 }
 0xd54   :  { %v1455_v50 = vpop.permute.xlu0 %1454  ;;  %3097 = vmatprep.subr.mxu1 %v3280_v34 }
 0xd55   :  { %3083 = vmatpush3.xpose.msk.msra.mxu0 %vm227_vm2, %v1455_v50  ;;  %v2820_v50 = vld [vmem:[%s3848_s6 + $0x20] sm:$0xff] }
 0xd56   :  { %3090 = vmatmul.mubr.msk.f32.vlgmr.msra.gmra.mxu1 %vm227_vm2, %v3636_v39  ;;  %3092 = vmatprep.subr.mxu0 %v3280_v34 }
 0xd57   :  { %3099 = vmatprep.mubr.msk.f32.mxu1 %vm3281_vm1, %v3280_v34 }
 0xd58   :  { %3085 = vmatmul.mubr.msk.f32.vlgmr.msra.gmra.mxu0 %vm227_vm2, %v3638_v48 }
 0xd59   :  { %3094 = vmatprep.mubr.msk.f32.mxu0 %vm3281_vm1, %v3280_v34 }
 0xe16   :  { %v1603_v51 = vpop.f32.mrf.mxu1 }
 0xe17   :  { %v1604_v52 = vadd.f32 %v3467_v46, %v1603_v51 }
 0xe18   :  { %v1526_v53 = vpop.f32.mrf.mxu0  ;;  %v3091_v54 = vpop.f32.mrf.mxu1 }
 0xe19   :  { %v1527_v55 = vadd.f32 %v3461_v42, %v1526_v53  ;;  %v1610_v56 = vsel %vm379_vm3, %v1604_v52, -inf  ;;  %v2822_v53 = vld [vmem:[%s3848_s6 + $0x30] sm:$0xff] }
 0xe1a   :  { %1611 = vmax.xlane.f32.xlu0 %v1610_v56  ;;  %v3086_v57 = vpop.f32.mrf.mxu0 }
 0xe1b   :  { %v1607_v58 = vsel %vm379_vm3, %v1527_v55, -inf }
 0xe1c   :  { %1608 = vmax.xlane.f32.xlu1 %v1607_v58 }
 0xea3   :  { %v1612_v59 = vpop.xlane.xlu0 %1611 }
 0xea4   :  { %v1614_v60 = vsub.f32 %v1604_v52, %v1612_v59  ;;  %v2823_v52 = vld [vmem:[%s3848_s6 + $0x38] sm:$0xff] }
 0xea5   :  { %v1609_v61 = vpop.xlane.xlu1 %1608 }
 0xea6   :  { %v1617_v62 = vmul.f32 1.442695, %v1614_v60  ;;  %v1613_v63 = vsub.f32 %v1527_v55, %v1609_v61  ;;  %v2841_v60 = vld [vmem:[%s3849_s7 + $0x1] ss:$0 sm:$0xff] }
 0xea8   :  { %3228 = vpow2.f32 %v1617_v62  ;;  %v1615_v0 = vmul.f32 1.442695, %v1613_v63 }
 0xeaa   :  { %3230 = vpow2.f32 %v1615_v0 }
 0xeb5   :  { %v3229_v1 = vpop.eup %3228 }
 0xeb6   :  { %v1622_v2 = vsel %vm379_vm3, %v3229_v1, 0.0 }
 0xeb7   :  { %v3231_v3 = vpop.eup %3230  ;;  %1623 = vadd.xlane.f32.xlu1 %v1622_v2 }
 0xeb8   :  { %v1619_v4 = vsel %vm379_vm3, %v3231_v3, 0.0 }
 0xeb9   :  { %1620 = vadd.xlane.f32.xlu0 %v1619_v4 }
 0xec8   :  { %1705 = vrot.lane.b32.xlu1 %v3636_v39, %s3283_s21 }
 0xecc   :  { %1783 = vrot.lane.b32.xlu1 %v3638_v48, %s3284_s1 }
 0xecf   :  { %1629 = vrot.lane.b32.xlu0 %v3638_v48, %s3283_s21 }
 0xed0   :  { %1861 = vrot.lane.b32.xlu1 %v3636_v39, %s3284_s1 }
 0xed3   :  { %1781 = vrot.lane.b32.xlu0 %v3638_v48, %s3285_s22 }
 0xed4   :  { %1859 = vrot.lane.b32.xlu1 %v3636_v39, %s3285_s22 }
 0xf40   :  { %v1624_v5 = vpop.xlane.xlu1 %1623 }
 0xf41   :  { %3232 = vrcp.f32 %v1624_v5 }
 0xf42   :  { %v1621_v6 = vpop.xlane.xlu0 %1620 }
 0xf43   :  { %3234 = vrcp.f32 %v1621_v6 }
 0xf44   :  { %v1706_v7 = vpop.permute.xlu1 %1705 }
 0xf45   :  { %3098 = vmatpush3.msra.mxu1 %v1706_v7 }
 0xf46   :  { %v1630_v8 = vpop.permute.xlu0 %1629  ;;  %3107 = vmatprep.subr.mxu1 %v3280_v34 }
 0xf47   :  { %3093 = vmatpush3.msra.mxu0 %v1630_v8 }
 0xf48   :  { %v1784_v9 = vpop.permute.xlu1 %1783  ;;  %3102 = vmatprep.subr.mxu0 %v3280_v34 }
 0xf4a   :  { %v1782_v14 = vpop.permute.xlu0 %1781 }
 0xf4c   :  { %v1862_v33 = vpop.permute.xlu1 %1861 }
 0xf4e   :  { %v3233_v10 = vpop.eup %3232 }
 0xf4f   :  { %v1628_v31 = vmul.f32 %v3233_v10, %v3229_v1 }
 0xf50   :  { %v3235_v11 = vpop.eup %3234  ;;  %v1860_v13 = vpop.permute.xlu1 %1859 }
 0xf51   :  { %3100 = vmatmul.mubr.msk.f32.vlgmr.msra.gmra.mxu1 %vm379_vm3, %v1628_v31  ;;  %v1626_v12 = vmul.f32 %v3235_v11, %v3231_v3 }
 0xf52   :  { %3108 = vmatpush3.xpose.msk.msra.mxu1 %vm227_vm2, %v1862_v33  ;;  %3109 = vmatprep.mubr.msk.f32.mxu1 %vm3281_vm1, %v3280_v34 }
 0xf53   :  { %3095 = vmatmul.mubr.msk.f32.vlgmr.msra.gmra.mxu0 %vm379_vm3, %v1626_v12  ;;  %3117 = vmatprep.subr.mxu1 %v3280_v34 }
 0xf54   :  { %3103 = vmatpush3.xpose.msk.msra.mxu0 %vm227_vm2, %v1784_v9  ;;  %3104 = vmatprep.mubr.msk.f32.mxu0 %vm3281_vm1, %v3280_v34 }
 0xf55   :  { %3110 = vmatmul.mubr.msk.f32.vlgmr.msra.gmra.mxu1 %vm227_vm2, %v1860_v13  ;;  %3112 = vmatprep.subr.mxu0 %v3280_v34 }
 0xf56   :  { %3119 = vmatprep.mubr.msk.f32.mxu1 %vm3281_vm1, %v3280_v34 }
 0xf57   :  { %3105 = vmatmul.mubr.msk.f32.vlgmr.msra.gmra.mxu0 %vm227_vm2, %v1782_v14  ;;  %v2848_v14 = vld [vmem:[%s3852_s10 + $0x30] sm:$0xff] }
 0xf58   :  { %3114 = vmatprep.mubr.msk.f32.mxu0 %vm3281_vm1, %v3280_v34 }
0x1011   :  { %v1777_v15 = vpop.f32.mrf.mxu1 }
0x1013   :  { %v1701_v16 = vpop.f32.mrf.mxu0  ;;  %v3101_v17 = vpop.f32.mrf.mxu1 }
0x1015   :  { %v3096_v18 = vpop.f32.mrf.mxu0  ;;  %v1933_v19 = vpop.f32.mrf.mxu1 }
0x1016   :  { %v1934_v20 = vadd.f32 %v3467_v46, %v1933_v19 }
0x1017   :  { %v1855_v21 = vpop.f32.mrf.mxu0  ;;  %v3111_v22 = vpop.f32.mrf.mxu1 }
0x1018   :  { %v1856_v23 = vadd.f32 %v3461_v42, %v1855_v21  ;;  %v1940_v24 = vsel %vm379_vm3, %v1934_v20, -inf }
0x1019   :  { %1941 = vmax.xlane.f32.xlu1 %v1940_v24  ;;  %v3106_v25 = vpop.f32.mrf.mxu0  ;;  %v2844_v24 = vld [vmem:[%s3850_s8 + $0x1] ss:$0 sm:$0xff] }
0x101a   :  { %v1937_v26 = vsel %vm379_vm3, %v1856_v23, -inf }
0x101b   :  { %1938 = vmax.xlane.f32.xlu0 %v1937_v26 }
0x102a   :  { %2035 = vrot.lane.b32.xlu1 %v3636_v39, %s3286_s23 }
0x10a2   :  { %v1942_v27 = vpop.xlane.xlu1 %1941 }
0x10a3   :  { %v1944_v28 = vsub.f32 %v1934_v20, %v1942_v27 }
0x10a4   :  { %v1939_v29 = vpop.xlane.xlu0 %1938 }
0x10a5   :  { %v1947_v30 = vmul.f32 1.442695, %v1944_v28  ;;  %v1943_v32 = vsub.f32 %v1856_v23, %v1939_v29  ;;  %v2845_v29 = vld [vmem:[%s3851_s9 + $0x1] ss:$0 sm:$0xff] }
0x10a6   :  { %v2036_v46 = vpop.permute.xlu1 %2035 }
0x10a7   :  { %3236 = vpow2.f32 %v1947_v30  ;;  %v1945_v35 = vmul.f32 1.442695, %v1943_v32  ;;  %3118 = vmatpush3.msra.mxu1 %v2036_v46 }
0x10a8   :  { %3129 = vmatprep.subr.mxu1 %v2821_v40 }
0x10a9   :  { %3238 = vpow2.f32 %v1945_v35  ;;  %v2861_v35 = vld [vmem:[%s3854_s12 + $0x78] sm:$0xff] }
0x10b4   :  { %v3237_v42 = vpop.eup %3236 }
0x10b5   :  { %v1952_v36 = vsel %vm379_vm3, %v3237_v42, 0.0 }
0x10b6   :  { %v3239_v37 = vpop.eup %3238  ;;  %1953 = vadd.xlane.f32.xlu0 %v1952_v36  ;;  %v2859_v36 = vld [vmem:[%s3854_s12 + $0x68] sm:$0xff] }
0x10b7   :  { %v1949_v38 = vsel %vm379_vm3, %v3239_v37, 0.0 }
0x10ba   :  { %1950 = vadd.xlane.f32.xlu0 %v1949_v38  ;;  %v2857_v38 = vld [vmem:[%s3854_s12 + $0x58] sm:$0xff] }
0x10d0   :  { %1959 = vrot.lane.b32.xlu0 %v3638_v48, %s3286_s23 }
0x113f   :  { %v1954_v44 = vpop.xlane.xlu0 %1953 }
0x1140   :  { %3240 = vrcp.f32 %v1954_v44  ;;  %v2855_v44 = vld [vmem:[%s3854_s12 + $0x48] sm:$0xff] }
0x1143   :  { %v1951_v45 = vpop.xlane.xlu0 %1950 }
0x1144   :  { %3242 = vrcp.f32 %v1951_v45  ;;  %v2854_v45 = vld [vmem:[%s3854_s12 + $0x40] sm:$0xff] }
0x1147   :  { %v1960_v39 = vpop.permute.xlu0 %1959 }
0x1148   :  { %3113 = vmatpush3.msra.mxu0 %v1960_v39  ;;  %v2851_v39 = vld [vmem:[%s3853_s11 + $0x1] ss:$0 sm:$0xff] }
0x1149   :  { %3122 = vmatprep.subr.mxu0 %v2823_v52 }
0x114d   :  { %v3241_v47 = vpop.eup %3240 }
0x114e   :  { %v1958_v49 = vmul.f32 %v3241_v47, %v3237_v42  ;;  %v2860_v42 = vld [vmem:[%s3854_s12 + $0x70] sm:$0xff] }
0x1150   :  { %3120 = vmatmul.mubr.msk.f32.vlgmr.msra.gmra.mxu1 %vm379_vm3, %v1958_v49 }
0x1151   :  { %v3243_v48 = vpop.eup %3242  ;;  %3130 = vmatpush3.msra.mxu1 %v2821_v40  ;;  %3133 = vmatprep.mubr.msk.f32.mxu1 %vm227_vm2, %v1701_v16  ;;  %v2846_v16 = vld [vmem:[%s3852_s10 + $0x20] sm:$0xff]  ;;  %v2856_v40 = vld [vmem:[%s3854_s12 + $0x50] sm:$0xff] }
0x1152   :  { %3131 = vmatprep.subr.mxu1 %v2820_v50  ;;  %v1956_v51 = vmul.f32 %v3243_v48, %v3239_v37  ;;  %v2858_v37 = vld [vmem:[%s3854_s12 + $0x60] sm:$0xff] }
0x1153   :  { %3132 = vmatpush3.msra.mxu1 %v2820_v50 }
0x1154   :  { %3115 = vmatmul.mubr.msk.f32.vlgmr.msra.gmra.mxu0 %vm379_vm3, %v1956_v51  ;;  %3134 = vmatmul.mubr.msk.f32.vlgmr.msra.gmra.mxu1 %vm227_vm2, %v1777_v15  ;;  %v2847_v15 = vld [vmem:[%s3852_s10 + $0x28] sm:$0xff] }
0x1155   :  { %3123 = vmatpush3.msra.mxu0 %v2823_v52  ;;  %3147 = vmatprep.subr.mxu1 %v2861_v35 }
0x1156   :  { %3124 = vmatprep.subr.mxu0 %v2822_v53  ;;  %3148 = vmatpush3.msra.mxu1 %v2861_v35 }
0x1157   :  { %3125 = vmatpush3.msra.mxu0 %v2822_v53  ;;  %3149 = vmatprep.subr.mxu1 %v2860_v42 }
0x1158   :  { %3150 = vmatpush3.msra.mxu1 %v2860_v42  ;;  %v2869_v42 = vld [vmem:[%s3857_s15 + $0x1] ss:$0 sm:$0xff] }
0x1159   :  { %3151 = vmatprep.subr.mxu1 %v2859_v36 }
0x115a   :  { %3152 = vmatpush3.msra.mxu1 %v2859_v36 }
0x115b   :  { %3153 = vmatprep.subr.mxu1 %v2858_v37 }
0x115c   :  { %3154 = vmatpush3.msra.mxu1 %v2858_v37 }
0x115d   :  { %3155 = vmatprep.subr.mxu1 %v2857_v38 }
0x115e   :  { %3156 = vmatpush3.msra.mxu1 %v2857_v38 }
0x115f   :  { %3157 = vmatprep.subr.mxu1 %v2856_v40 }
0x1160   :  { %3158 = vmatpush3.msra.mxu1 %v2856_v40 }
0x1161   :  { %3159 = vmatprep.subr.mxu1 %v2855_v44 }
0x1162   :  { %3160 = vmatpush3.msra.mxu1 %v2855_v44 }
0x1163   :  { %3161 = vmatprep.subr.mxu1 %v2854_v45 }
0x1164   :  { %3162 = vmatpush3.msra.mxu1 %v2854_v45 }
0x1210   :  { %v2107_v54 = vpop.f32.mrf.mxu1 }
0x1212   :  { %v3121_v55 = vpop.f32.mrf.mxu1 }
0x1214   :  { %v2031_v56 = vpop.f32.mrf.mxu0  ;;  %v3135_v58 = vpop.f32.mrf.mxu1 }
0x1215   :  { %3126 = vmatprep.mubr.msk.f32.mxu0 %vm227_vm2, %v2031_v56 }
0x1216   :  { %v3116_v57 = vpop.f32.mrf.mxu0  ;;  %3127 = vmatmul.mubr.msk.f32.vlgmr.msra.gmra.mxu0 %vm227_vm2, %v2107_v54  ;;  %v2264_v62 = vpop.f32.mrf.mxu1 }
0x12d6   :  { %v3128_v59 = vpop.f32.mrf.mxu0 }
0x12d7   :  { %v2270_v61 = vadd.f32 %v3135_v58, %v3128_v59 }
0x12d8   :  { %v2183_v63 = vpop.f32.mrf.mxu0 }
0x12d9   :  { %v2282_v0 = vadd.f32 %v2841_v60, %v2270_v61  ;;  %v2265_v1 = vadd.f32 %v2264_v62, %v2183_v63 }
0x12db   :  { %v2281_v2 = vadd.f32 %v2841_v60, %v2265_v1  ;;  %v2284_v3 = vadd.f32 %v2282_v0, %v3625_v43 }
0x12dd   :  { %v2292_v4 = vsel %vm72_vm0, %v2284_v3, 0.0  ;;  %v2283_v5 = vadd.f32 %v2281_v2, %v3623_v41  ;;  %v2849_v41 = vld [vmem:[%s3852_s10 + $0x38] sm:$0xff] }
0x12de   :  { %2293 = vadd.xlane.f32.xlu0 %v2292_v4  ;;  %3136 = vmatprep.subr.mxu0 %v2849_v41 }
0x12df   :  { %v2289_v6 = vsel %vm72_vm0, %v2283_v5, 0.0  ;;  %3137 = vmatpush3.msra.mxu0 %v2849_v41 }
0x12e0   :  { %2290 = vadd.xlane.f32.xlu1 %v2289_v6  ;;  %3138 = vmatprep.subr.mxu0 %v2848_v14 }
0x12e1   :  { %3139 = vmatpush3.msra.mxu0 %v2848_v14 }
0x12e2   :  { %3140 = vmatprep.subr.mxu0 %v2847_v15 }
0x12e3   :  { %3141 = vmatpush3.msra.mxu0 %v2847_v15 }
0x12e4   :  { %3142 = vmatprep.subr.mxu0 %v2846_v16 }
0x12e5   :  { %3143 = vmatpush3.msra.mxu0 %v2846_v16 }
0x12e6   :  { %3166 = vmatprep.subr.mxu0 %v3280_v34 }
0x1367   :  { %v2294_v7 = vpop.xlane.xlu0 %2293 }
0x1368   :  { %v2296_v8 = vmul.f32 0.03125, %v2294_v7 }
0x1369   :  { %v2291_v9 = vpop.xlane.xlu1 %2290 }
0x136a   :  { %v2298_v10 = vsub.f32 %v2284_v3, %v2296_v8  ;;  %v2295_v33 = vmul.f32 0.03125, %v2291_v9 }
0x136c   :  { %v2297_v31 = vsub.f32 %v2283_v5, %v2295_v33  ;;  %v2300_v11 = vmul.f32 %v2298_v10, %v2298_v10  ;;  %v2863_v5 = vld [vmem:[%s3855_s13 + $0x1] ss:$0 sm:$0xff] }
0x136e   :  { %v2304_v12 = vsel %vm72_vm0, %v2300_v11, 0.0  ;;  %v2299_v13 = vmul.f32 %v2297_v31, %v2297_v31 }
0x136f   :  { %2305 = vadd.xlane.f32.xlu1 %v2304_v12 }
0x1370   :  { %v2301_v43 = vsel %vm72_vm0, %v2299_v13, 0.0 }
0x1371   :  { %2302 = vadd.xlane.f32.xlu0 %v2301_v43 }
0x13f8   :  { %v2306_v17 = vpop.xlane.xlu1 %2305 }
0x13f9   :  { %v2308_v18 = vmul.f32 0.03125, %v2306_v17 }
0x13fa   :  { %v2303_v19 = vpop.xlane.xlu0 %2302 }
0x13fb   :  { %v2310_v20 = vadd.f32 1e-12, %v2308_v18  ;;  %v2307_v21 = vmul.f32 0.03125, %v2303_v19 }
0x13fd   :  { %3244 = vrsqrt.f32 %v2310_v20  ;;  %v2309_v22 = vadd.f32 1e-12, %v2307_v21  ;;  %v2597_v20 = vld [vmem:[%s3858_s16 + $0x18] sm:$0xff]  ;;  %v2596_v21 = vld [vmem:[%s3858_s16 + $0x10] sm:$0xff] }
0x13ff   :  { %3246 = vrsqrt.f32 %v2309_v22  ;;  %v2595_v22 = vld [vmem:[%s3858_s16 + $0x8] sm:$0xff] }
0x140a   :  { %v3245_v23 = vpop.eup %3244 }
0x140b   :  { %v2314_v25 = vmul.f32 %v3245_v23, %v2298_v10  ;;  %v2594_v23 = vld [vmem:[%s3858_s16] sm:$0xff] }
0x140c   :  { %v3247_v26 = vpop.eup %3246 }
0x140d   :  { %v2313_v27 = vmul.f32 %v3247_v26, %v2297_v31  ;;  %v2322_v28 = vmul.f32 %v2844_v24, %v2314_v25 }
0x140f   :  { %v2321_v30 = vmul.f32 %v2844_v24, %v2313_v27  ;;  %v2330_v46 = vadd.f32 %v2845_v29, %v2322_v28 }
0x1411   :  { %v3748_v32 = vadd.f32 %v2845_v29, %v2321_v30 }
0x1413   :  { %3144 = vmatprep.mubr.msk.f32.mxu0 %vm72_vm0, %v3748_v32 }
0x1414   :  { %3145 = vmatmul.mubr.msk.f32.vlgmr.msra.gmra.mxu0 %vm72_vm0, %v2330_v46 }
0x1415   :  { %3174 = vmatprep.mubr.msk.f32.mxu0 %vm3281_vm1, %v3280_v34  ;;  %3167 = vmatpush3.msra.mxu0 %v2597_v20 }
0x1416   :  { %3168 = vmatprep.subr.mxu0 %v3280_v34 }
0x1417   :  { %3169 = vmatpush3.msra.mxu0 %v2596_v21 }
0x1418   :  { %3170 = vmatprep.subr.mxu0 %v3280_v34 }
0x1419   :  { %3171 = vmatpush3.msra.mxu0 %v2595_v22 }
0x141a   :  { %3172 = vmatprep.subr.mxu0 %v3280_v34 }
0x141b   :  { %3173 = vmatpush3.msra.mxu0 %v2594_v23 }
0x141c   :  { %3177 = vmatprep.subr.mxu0 %v3280_v34 }
0x14d4   :  { %v3146_v47 = vpop.f32.mrf.mxu0 }
0x14d5   :  { %v2422_v49 = vadd.f32 %v3146_v47, %v2851_v39  ;;  %v2682_v47 = vld [vmem:[%s3860_s18 + $0x18] sm:$0xff] }
0x14d6   :  { %v2416_v50 = vpop.f32.mrf.mxu0 }
0x14d7   :  { %v2426_v48 = vmul.f32 %v2422_v49, %v2422_v49  ;;  %v2417_v51 = vadd.f32 %v2851_v39, %v2416_v50  ;;  %v2680_v50 = vld [vmem:[%s3860_s18 + $0x8] sm:$0xff] }
0x14d9   :  { %v2428_v52 = vmul.f32 %v2426_v48, %v2422_v49  ;;  %v2425_v53 = vmul.f32 %v2417_v51, %v2417_v51  ;;  %v2679_v48 = vld [vmem:[%s3860_s18] sm:$0xff] }
0x14db   :  { %v2430_v54 = vmul.f32 0.044715, %v2428_v52  ;;  %v2427_v55 = vmul.f32 %v2425_v53, %v2417_v51 }
0x14dd   :  { %v2432_v56 = vadd.f32 %v2430_v54, %v2422_v49  ;;  %v2429_v57 = vmul.f32 0.044715, %v2427_v55 }
0x14df   :  { %v2434_v58 = vmul.f32 0.7978846, %v2432_v56  ;;  %v2431_v59 = vadd.f32 %v2429_v57, %v2417_v51  ;;  %v2872_v56 = vld [vmem:[%s3861_s19] ss:$0 sm:$0xff] }
0x14e1   :  { %3248 = vtanh.f32 %v2434_v58  ;;  %v2433_v60 = vmul.f32 0.7978846, %v2431_v59 }
0x14e3   :  { %3250 = vtanh.f32 %v2433_v60 }
0x14ee   :  { %v3249_v61 = vpop.eup %3248 }
0x14ef   :  { %v2438_v62 = vadd.f32 1.0, %v3249_v61 }
0x14f0   :  { %v3251_v63 = vpop.eup %3250 }
0x14f1   :  { %v2437_v0 = vadd.f32 1.0, %v3251_v63  ;;  %v2440_v1 = vmul.f32 0.5, %v2438_v62 }
0x14f3   :  { %v2439_v2 = vmul.f32 0.5, %v2437_v0  ;;  %v2442_v4 = vmul.f32 %v2440_v1, %v2422_v49  ;;  %v2681_v49 = vld [vmem:[%s3860_s18 + $0x10] sm:$0xff]  ;;  %s3287_s18 = smov [#allocation2]  }
0x14f4   :  { %s2770_s5 = sshll.u32 %s3287_s18, 4  ;;  %s2771_s5 = int_to_ptr.vmem [resolvable:$true] %s2770_s5 }
0x14f5   :  { %v2441_v3 = vmul.f32 %v2439_v2, %v2417_v51  ;;  %v2870_v51 = vld [vmem:[%s3859_s17] ss:$0 sm:$0xff]  ;;  %s3258_s11 = scalar_lea.vmem %s2771_s5, 32  ;;  %p3263_p1 = scmp.lt.s32.totalorder %s2771_s5, %s2771_s5 }
0x14f6   :  { %p3259_p0 = scmp.ne.s32.totalorder %s2771_s5, %s3258_s11  ;;  %p3264_p2 = scmp.lt.s32.totalorder %s3258_s11, %s3258_s11 }
0x14f7   :  { %3163 = vmatprep.mubr.msk.f32.mxu1 %vm1226_vm4, %v2441_v3 }
0x14f8   :  { %3164 = vmatmul.mubr.msk.f32.vlgmr.msra.gmra.mxu1 %vm1226_vm4, %v2442_v4  ;;  %p3265_p3 = por %p3264_p2, %p3263_p1 }
0x14fa   :  { %p3266_p4 = pnand %p3265_p3, %p3259_p0 }
0x15b8   :  { %v3165_v6 = vpop.f32.mrf.mxu1 }
0x15b9   :  { %v2538_v7 = vadd.f32 %v3165_v6, %v2863_v5 }
0x15ba   :  { %v2532_v8 = vpop.f32.mrf.mxu1 }
0x15bb   :  { %v2533_v9 = vadd.f32 %v2863_v5, %v2532_v8  ;;  %v2542_v10 = vadd.f32 %v2538_v7, %v2330_v46 }
0x15bd   :  { %v2550_v33 = vsel %vm72_vm0, %v2542_v10, 0.0  ;;  %v2541_v31 = vadd.f32 %v2533_v9, %v3748_v32  ;;  %v2868_v32 = vld [vmem:[%s3856_s14 + $0x1] ss:$0 sm:$0xff] }
0x15be   :  { %2551 = vadd.xlane.f32.xlu0 %v2550_v33 }
0x15bf   :  { %v2547_v11 = vsel %vm72_vm0, %v2541_v31, 0.0 }
0x15c0   :  { %2548 = vadd.xlane.f32.xlu1 %v2547_v11 }
0x1647   :  { %v2552_v12 = vpop.xlane.xlu0 %2551 }
0x1648   :  { %v2554_v13 = vmul.f32 0.03125, %v2552_v12 }
0x1649   :  { %v2549_v43 = vpop.xlane.xlu1 %2548 }
0x164a   :  { %v2556_v41 = vsub.f32 %v2542_v10, %v2554_v13  ;;  %v2553_v14 = vmul.f32 0.03125, %v2549_v43 }
0x164c   :  { %v2555_v15 = vsub.f32 %v2541_v31, %v2553_v14  ;;  %v2558_v16 = vmul.f32 %v2556_v41, %v2556_v41 }
0x164e   :  { %v2562_v17 = vsel %vm72_vm0, %v2558_v16, 0.0  ;;  %v2557_v18 = vmul.f32 %v2555_v15, %v2555_v15 }
0x164f   :  { %2563 = vadd.xlane.f32.xlu0 %v2562_v17 }
0x1650   :  { %v2559_v19 = vsel %vm72_vm0, %v2557_v18, 0.0 }
0x1651   :  { %2560 = vadd.xlane.f32.xlu1 %v2559_v19 }
0x16d8   :  { %v2564_v24 = vpop.xlane.xlu0 %2563 }
0x16d9   :  { %v2566_v25 = vmul.f32 0.03125, %v2564_v24 }
0x16da   :  { %v2561_v26 = vpop.xlane.xlu1 %2560 }
0x16db   :  { %v2568_v27 = vadd.f32 1e-12, %v2566_v25  ;;  %v2565_v28 = vmul.f32 0.03125, %v2561_v26 }
0x16dd   :  { %3252 = vrsqrt.f32 %v2568_v27  ;;  %v2567_v29 = vadd.f32 1e-12, %v2565_v28 }
0x16df   :  { %3254 = vrsqrt.f32 %v2567_v29 }
0x16ea   :  { %v3253_v30 = vpop.eup %3252 }
0x16eb   :  { %v2572_v46 = vmul.f32 %v3253_v30, %v2556_v41 }
0x16ec   :  { %v3255_v35 = vpop.eup %3254 }
0x16ed   :  { %v2571_v36 = vmul.f32 %v3255_v35, %v2555_v15  ;;  %v2580_v37 = vmul.f32 %v2868_v32, %v2572_v46 }
0x16ef   :  { %v2579_v38 = vmul.f32 %v2868_v32, %v2571_v36  ;;  %v2588_v40 = vadd.f32 %v2869_v42, %v2580_v37 }
0x16f1   :  { %v2587_v44 = vadd.f32 %v2869_v42, %v2579_v38  ;;  %v2590_v45 = vrot.slane %v2588_v40, 7 }
0x16f3   :  { %v2593_v39 = vsel %vm2592_vm5, %v2587_v44, %v2590_v45 }
0x16f4   :  { %3175 = vmatmul.mubr.msk.f32.vlgmr.msra.gmra.mxu0 %vm72_vm0, %v2593_v39 }
0x16f5   :  { %3185 = vmatprep.mubr.msk.f32.mxu0 %vm3281_vm1, %v3280_v34  ;;  %3178 = vmatpush3.msra.mxu0 %v2682_v47 }
0x16f6   :  { %3179 = vmatprep.subr.mxu0 %v3280_v34 }
0x16f7   :  { %3180 = vmatpush3.msra.mxu0 %v2681_v49 }
0x16f8   :  { %3181 = vmatprep.subr.mxu0 %v3280_v34 }
0x16f9   :  { %3182 = vmatpush3.msra.mxu0 %v2680_v50 }
0x16fa   :  { %3183 = vmatprep.subr.mxu0 %v3280_v34 }
0x16fb   :  { %3184 = vmatpush3.msra.mxu0 %v2679_v48 }
0x17b4   :  { %v2674_v52 = vpop.f32.mrf.mxu0 }
0x17b5   :  { %v2675_v53 = vadd.f32 %v2870_v51, %v2674_v52 }
0x17b6   :  { %v3176_v54 = vpop.f32.mrf.mxu0 }
0x17b7   :  { %3256 = vtanh.f32 %v2675_v53 }
0x17c4   :  { %v3257_v55 = vpop.eup %3256 }
0x17c5   :  { %3186 = vmatmul.mubr.msk.f32.vlgmr.msra.gmra.mxu0 %vm72_vm0, %v3257_v55 }
0x1885   :  { %v2759_v57 = vpop.f32.mrf.mxu0 }
0x1886   :  { %v2760_v34 = vadd.f32 %v2872_v56, %v2759_v57 }
0x1887   :  { %v3187_v58 = vpop.f32.mrf.mxu0 }
0x1888   :  { %2763 = vst [vmem:[#allocation2] sm:$0x3] %v2760_v34 }
0x1889   :  { %3269 = shalt.err (!%p3266_p4)
}
0x188a   :  { %2773 = dma.vmem_to_hbm [thread:$0]  %s2771_s5, 32, %s3862_s20, [#allocation3]  }
0x188b   :  { %3278 = dma.done.wait [#allocation3], 32  }
0x188c   :  { %3279 = vsyncadd [#allocation3], 4294967264 }
0x188d   :  { %2777 = vsyncpa [#allocation3], 1 }

</bundles_post_ra>
